<compile_context>
chip_gen: v6e
topology: v6e:2x2x1
jax: 0.10.0
libtpu: 0.0.40
codegen_flags: <defaults>
</compile_context>

<pallas_src>
import functools

import jax
import jax.numpy as jnp
from jax.experimental import pallas as pl
from jax.experimental.pallas import tpu as pltpu

_EPS = 1e-5
_SQRT2 = 1.4142135623730951


def _gelu(v):
    # exact (erf) GELU, matching F.gelu(approximate='none')
    return 0.5 * v * (1.0 + jax.lax.erf(v / _SQRT2))


def _layernorm_masked(v, gamma, beta, n_actual):
    """LayerNorm over the last dim; padded lanes (>= n_actual) are excluded
    from the statistics.  Padded gamma/beta are zero, so padded outputs are 0."""
    n_pad = v.shape[-1]
    mu = jnp.sum(v, axis=-1, keepdims=True) / n_actual
    d = v - mu
    if n_pad != n_actual:
        mask = jax.lax.broadcasted_iota(jnp.int32, v.shape, v.ndim - 1) < n_actual
        d2 = jnp.where(mask, d * d, 0.0)
    else:
        d2 = d * d
    var = jnp.sum(d2, axis=-1, keepdims=True) / n_actual
    return d * jax.lax.rsqrt(var + _EPS) * gamma + beta


def gmlp_cls_kernel(x_ref,
                    ln1_g_ref, ln1_b_ref, w1_ref, b1_ref,
                    ln2_g_ref, ln2_b_ref, wcls_ref, bcls_ref,
                    wsp_i_ref, bsp_i_ref, wsp_ii_ref, bsp_ii_ref,
                    w2_ref, b2_ref, o_ref,
                    *, d_actual, f_actual, mxu_dtype):
    Bt, S, Dp = x_ref.shape
    Fp = w1_ref.shape[1]

    x = x_ref[...].astype(jnp.float32)                      # (Bt, S, Dp)
    xr = x.reshape(Bt * S, Dp)                               # fold rows for MXU

    # outer LayerNorm (masked over padded lanes) + channel_proj_i + GELU
    xh = _layernorm_masked(xr, ln1_g_ref[...], ln1_b_ref[...], d_actual)
    h = _gelu(jnp.dot(xh.astype(mxu_dtype), w1_ref[...].astype(mxu_dtype),
                      preferred_element_type=jnp.float32) + b1_ref[...])   # (Bt*S, Fp)

    # --- SpatialGatingUnit_CLS ---
    u = _layernorm_masked(h, ln2_g_ref[...], ln2_b_ref[...], f_actual)     # (Bt*S, Fp)
    u3 = u.reshape(Bt, S, Fp)

    # CLS gate, kept entirely in f32 (a rounding-induced sign flip near zero
    # would switch the whole spatial branch).
    cls = u3[:, 0, :]                                                      # (Bt, Fp)
    score = jnp.tanh(jnp.sum(cls * wcls_ref[...], axis=-1, keepdims=True)
                     + bcls_ref[...])                                      # (Bt, 1)
    use_ii = score >= 0.0                                                  # (Bt, 1)

    # Shared-weight spatial projections over an (S, Bt*Fp) slab: two 2-D MXU
    # matmuls, then select the OUTPUTS per sample (no (Bt,S,S) broadcast, no
    # batched small matmuls).
    u_slab = jnp.transpose(u3, (1, 0, 2)).reshape(S, Bt * Fp).astype(mxu_dtype)
    out_i = jnp.dot(wsp_i_ref[...].astype(mxu_dtype), u_slab,
                    preferred_element_type=jnp.float32).reshape(S, Bt, Fp)
    out_ii = jnp.dot(wsp_ii_ref[...].astype(mxu_dtype), u_slab,
                     preferred_element_type=jnp.float32).reshape(S, Bt, Fp)
    sel = jnp.where(use_ii[None, :, :], out_ii, out_i)                     # (S, Bt, Fp)
    bsp = jnp.where(use_ii[:, :, None], bsp_ii_ref[...][None],
                    bsp_i_ref[...][None])                                  # (Bt, S, 1)

    # SGU bias + residual fused directly into the GELU input (fewer live
    # F-wide f32 intermediates).
    g = _gelu(jnp.transpose(sel, (1, 0, 2)) + bsp + h.reshape(Bt, S, Fp))
    g = g.reshape(Bt * S, Fp)

    # channel_proj_ii + outer residual
    y = jnp.dot(g.astype(mxu_dtype), w2_ref[...].astype(mxu_dtype),
                preferred_element_type=jnp.float32) + b2_ref[...]          # (Bt*S, Dp)
    o_ref[...] = (x + y.reshape(Bt, S, Dp)).astype(o_ref.dtype)


# ----------------------------- wrapper helpers -----------------------------

def _round_up(n, m):
    return ((n + m - 1) // m) * m


def _pad_to(a, shape):
    pads = [(0, t - s) for s, t in zip(a.shape, shape)]
    if all(p == (0, 0) for p in pads):
        return a
    return jnp.pad(a, pads)


def _vmem_capacity_bytes():
    try:
        info = pltpu.get_tpu_info()
        for name in ("vmem_capacity_bytes", "vmem_size_bytes", "vmem_bytes"):
            v = getattr(info, name, None)
            if v:
                return int(v)
    except Exception:
        pass
    return 64 * 1024 * 1024   # conservative (v7x per-TC) fallback


def _pick_block_batch(B, S, Dp, Fp, budget_bytes, target_rows=512):
    """Largest batch block (divisor of B) whose estimated VMEM footprint fits,
    keeping >= 2 grid steps when possible (megacore / pipelining) and
    preferring 128-aligned Bt*S row counts for the MXU M dimension."""
    def est(bt):
        act = bt * S * 4 * (4 * Dp + 6 * Fp)        # x in/out + F-wide intermediates
        wts = 8 * (2 * Dp * Fp + 2 * S * S)         # worst case: double-buffered weights
        return act + wts

    divs = [d for d in range(1, B + 1) if B % d == 0]
    fit = [d for d in divs if est(d) <= budget_bytes] or [1]
    multi = [d for d in fit if B // d >= 2]
    cands = multi or fit
    aligned = [d for d in cands if (d * S) % 128 == 0 and d * S >= target_rows]
    if aligned:
        return aligned[0]                            # smallest aligned block >= target rows
    big = [d for d in cands if d * S >= target_rows]
    return big[0] if big else cands[-1]


def gmlp_block_cls(x, p, *, block_batch=None, mxu_dtype=jnp.bfloat16):
    B, S, D = x.shape
    F = p["w1"].shape[1]
    Dp = _round_up(D, 128)
    Fp = _round_up(F, 128)

    # zero-pad lane dims to multiples of 128 (lane-dense MXU operands / stores)
    xp = _pad_to(x, (B, S, Dp))
    w = dict(
        ln1_g=_pad_to(p["ln1_g"], (1, Dp)), ln1_b=_pad_to(p["ln1_b"], (1, Dp)),
        w1=_pad_to(p["w1"], (Dp, Fp)),      b1=_pad_to(p["b1"], (1, Fp)),
        ln2_g=_pad_to(p["ln2_g"], (1, Fp)), ln2_b=_pad_to(p["ln2_b"], (1, Fp)),
        wcls=_pad_to(p["wcls"], (1, Fp)),   bcls=p["bcls"],
        wsp_i=p["wsp_i"], bsp_i=p["bsp_i"],
        wsp_ii=p["wsp_ii"], bsp_ii=p["bsp_ii"],
        w2=_pad_to(p["w2"], (Fp, Dp)),      b2=_pad_to(p["b2"], (1, Dp)),
    )
    order = ("ln1_g", "ln1_b", "w1", "b1", "ln2_g", "ln2_b", "wcls", "bcls",
             "wsp_i", "bsp_i", "wsp_ii", "bsp_ii", "w2", "b2")
    weights = [w[k] for k in order]

    # generation-aware VMEM budget: ~48 MiB on v7x (64 MiB/TC), ~96 MiB on v5e/v6e
    cap = _vmem_capacity_bytes()
    vmem_limit = min(int(cap * 0.75), cap - (8 << 20))
    Bt = (block_batch if block_batch is not None
          else _pick_block_batch(B, S, Dp, Fp, int(vmem_limit * 0.7)))
    assert B % Bt == 0, "block_batch must divide batch"

    kernel = functools.partial(gmlp_cls_kernel, d_actual=D, f_actual=F,
                               mxu_dtype=mxu_dtype)

    def build(single_buffer_weights):
        def wspec(arr):
            nd = arr.ndim
            kw = dict(pipeline_mode=pl.Buffered(1)) if single_buffer_weights else {}
            return pl.BlockSpec(arr.shape, lambda b, _nd=nd: (0,) * _nd, **kw)

        in_specs = ([pl.BlockSpec((Bt, S, Dp), lambda b: (b, 0, 0))]
                    + [wspec(a) for a in weights])
        out_spec = pl.BlockSpec((Bt, S, Dp), lambda b: (b, 0, 0))
        return pl.pallas_call(
            kernel,
            out_shape=jax.ShapeDtypeStruct((B, S, Dp), x.dtype),
            grid_spec=pltpu.PrefetchScalarGridSpec(
                num_scalar_prefetch=0,
                grid=(B // Bt,),
                in_specs=in_specs,
                out_specs=out_spec),
            compiler_params=pltpu.CompilerParams(
                dimension_semantics=("parallel",),
                vmem_limit_bytes=vmem_limit),
        )

    try:
        # single-buffer the constant-index weights (halves their VMEM footprint)
        out = jax.block_until_ready(build(True)(xp, *weights))
    except Exception:
        # fallback if this JAX version rejects pipeline_mode / Buffered(1)
        out = build(False)(xp, *weights)
    return out[:, :, :D]


# ------------------------------- pure-JAX ref -------------------------------

def ref_forward(x, p):
    """Pure-JAX reference mirroring the PyTorch forward.  Returns (out, score)."""
    def ln(v, g, b):
        mu = v.mean(-1, keepdims=True)
        var = ((v - mu) ** 2).mean(-1, keepdims=True)
        return (v - mu) / jnp.sqrt(var + _EPS) * g + b

    gelu = lambda v: 0.5 * v * (1.0 + jax.lax.erf(v / _SQRT2))

    res = x
    h = gelu(ln(x, p["ln1_g"], p["ln1_b"]) @ p["w1"] + p["b1"])
    u = ln(h, p["ln2_g"], p["ln2_b"])
    cls = u[:, 0, :]
    score = jnp.tanh(jnp.sum(cls * p["wcls"], -1, keepdims=True) + p["bcls"][0])
    use_ii = score >= 0.0                                   # proj_ii iff score >= 0
    out_i = jnp.einsum("oi,bif->bof", p["wsp_i"], u) + p["bsp_i"][None]
    out_ii = jnp.einsum("oi,bif->bof", p["wsp_ii"], u) + p["bsp_ii"][None]
    sgu = jnp.where(use_ii[:, :, None], out_ii, out_i) + h
    y = gelu(sgu) @ p["w2"] + p["b2"]
    return res + y, score


if __name__ == "__main__":
    B, S, D, F = 2, 8, 32, 64   # batch, seq_len, d_model, d_ffn

    key = jax.random.PRNGKey(0)
    ks = jax.random.split(key, 10)

    x = jax.random.normal(ks[0], (B, S, D), jnp.float32)

    params = {
        # gMLP block LayerNorm(d_model)
        "ln1_g": jnp.ones((1, D), jnp.float32),
        "ln1_b": jnp.zeros((1, D), jnp.float32),
        # channel_proj_i: Linear(d_model, d_ffn) stored as (in, out)
        "w1": 0.1 * jax.random.normal(ks[1], (D, F), jnp.float32),
        "b1": 0.1 * jax.random.normal(ks[2], (1, F), jnp.float32),
        # SGU LayerNorm(d_ffn)
        "ln2_g": jnp.ones((1, F), jnp.float32),
        "ln2_b": jnp.zeros((1, F), jnp.float32),
        # spatial_cls: Linear(d_ffn, 1)
        "wcls": 0.1 * jax.random.normal(ks[3], (1, F), jnp.float32),
        "bcls": 0.1 * jax.random.normal(ks[4], (1, 1), jnp.float32),
        # spatial_proj_i / _ii: Conv1d(seq_len, seq_len, 1) -> (S, S) weight, bias=1.0
        "wsp_i": 0.1 * jax.random.normal(ks[5], (S, S), jnp.float32),
        "bsp_i": jnp.ones((S, 1), jnp.float32),
        "wsp_ii": 0.1 * jax.random.normal(ks[6], (S, S), jnp.float32),
        "bsp_ii": jnp.ones((S, 1), jnp.float32),
        # channel_proj_ii: Linear(d_ffn, d_model)
        "w2": 0.1 * jax.random.normal(ks[7], (F, D), jnp.float32),
        "b2": 0.1 * jax.random.normal(ks[8], (1, D), jnp.float32),
    }

    ref, ref_score = ref_forward(x, params)
    gate_margin = float(jnp.min(jnp.abs(ref_score)))

    # 1) Semantics check: f32 MXU operands vs. pure-JAX reference.
    out_exact = jax.block_until_ready(
        gmlp_block_cls(x, params, mxu_dtype=jnp.float32))
    assert out_exact.shape == (B, S, D)
    assert bool(jnp.all(jnp.isfinite(out_exact)))
    if gate_margin > 1e-3:   # skip only if a gate score sits on a knife edge
        assert jnp.allclose(out_exact, ref, rtol=2e-2, atol=2e-2), (
            f"max abs diff {jnp.max(jnp.abs(out_exact - ref))}")

    # 2) Default fast path: bf16 MXU operands, f32 accumulation / LN stats / gate.
    out_fast = jax.block_until_ready(gmlp_block_cls(x, params))
    assert out_fast.shape == (B, S, D)
    assert bool(jnp.all(jnp.isfinite(out_fast)))
    if gate_margin > 1e-2:   # bf16 rounding could legitimately flip a ~0 score
        assert jnp.allclose(out_fast, ref, rtol=2e-2, atol=2e-2), (
            f"max abs diff {jnp.max(jnp.abs(out_fast - ref))}")

    print("KERNEL_OK")
</pallas_src>

<mosaic_0001>
module attributes {stable_mosaic.version = 11 : i64} {
  func.func @gmlp_cls_kernel(%arg0: i32, %arg1: memref<1x8x128xf32, #tpu.memory_space<vmem>>, %arg2: memref<1x128xf32, #tpu.memory_space<vmem>>, %arg3: memref<1x128xf32, #tpu.memory_space<vmem>>, %arg4: memref<128x128xf32, #tpu.memory_space<vmem>>, %arg5: memref<1x128xf32, #tpu.memory_space<vmem>>, %arg6: memref<1x128xf32, #tpu.memory_space<vmem>>, %arg7: memref<1x128xf32, #tpu.memory_space<vmem>>, %arg8: memref<1x128xf32, #tpu.memory_space<vmem>>, %arg9: memref<1x1xf32, #tpu.memory_space<vmem>>, %arg10: memref<8x8xf32, #tpu.memory_space<vmem>>, %arg11: memref<8x1xf32, #tpu.memory_space<vmem>>, %arg12: memref<8x8xf32, #tpu.memory_space<vmem>>, %arg13: memref<8x1xf32, #tpu.memory_space<vmem>>, %arg14: memref<128x128xf32, #tpu.memory_space<vmem>>, %arg15: memref<1x128xf32, #tpu.memory_space<vmem>>, %arg16: memref<1x8x128xf32, #tpu.memory_space<vmem>>) attributes {dimension_semantics = [#tpu.dimension_semantics<parallel>], iteration_bounds = array<i64: 2>, scalar_prefetch = 0 : i64, scratch_operands = 0 : i64, tpu.core_type = #tpu.core_type<tc>, window_params = [{transform_indices = @transform_0, window_bounds = array<i64: 1, 8, 128>}, {pipeline_mode = #tpu.pipeline_mode<synchronous>, transform_indices = @transform_1, window_bounds = array<i64: 1, 128>}, {pipeline_mode = #tpu.pipeline_mode<synchronous>, transform_indices = @transform_2, window_bounds = array<i64: 1, 128>}, {pipeline_mode = #tpu.pipeline_mode<synchronous>, transform_indices = @transform_3, window_bounds = array<i64: 128, 128>}, {pipeline_mode = #tpu.pipeline_mode<synchronous>, transform_indices = @transform_4, window_bounds = array<i64: 1, 128>}, {pipeline_mode = #tpu.pipeline_mode<synchronous>, transform_indices = @transform_5, window_bounds = array<i64: 1, 128>}, {pipeline_mode = #tpu.pipeline_mode<synchronous>, transform_indices = @transform_6, window_bounds = array<i64: 1, 128>}, {pipeline_mode = #tpu.pipeline_mode<synchronous>, transform_indices = @transform_7, window_bounds = array<i64: 1, 128>}, {pipeline_mode = #tpu.pipeline_mode<synchronous>, transform_indices = @transform_8, window_bounds = array<i64: 1, 1>}, {pipeline_mode = #tpu.pipeline_mode<synchronous>, transform_indices = @transform_9, window_bounds = array<i64: 8, 8>}, {pipeline_mode = #tpu.pipeline_mode<synchronous>, transform_indices = @transform_10, window_bounds = array<i64: 8, 1>}, {pipeline_mode = #tpu.pipeline_mode<synchronous>, transform_indices = @transform_11, window_bounds = array<i64: 8, 8>}, {pipeline_mode = #tpu.pipeline_mode<synchronous>, transform_indices = @transform_12, window_bounds = array<i64: 8, 1>}, {pipeline_mode = #tpu.pipeline_mode<synchronous>, transform_indices = @transform_13, window_bounds = array<i64: 128, 128>}, {pipeline_mode = #tpu.pipeline_mode<synchronous>, transform_indices = @transform_14, window_bounds = array<i64: 1, 128>}, {transform_indices = @transform_15, window_bounds = array<i64: 1, 8, 128>}]} {
    %c0 = arith.constant 0 : index
    %c0_0 = arith.constant 0 : index
    %c0_1 = arith.constant 0 : index
    %0 = vector.load %arg1[%c0, %c0_0, %c0_1] : memref<1x8x128xf32, #tpu.memory_space<vmem>>, vector<1x8x128xf32>
    %1 = vector.shape_cast %0 : vector<1x8x128xf32> to vector<8x128xf32>
    %c0_2 = arith.constant 0 : index
    %c0_3 = arith.constant 0 : index
    %2 = vector.load %arg2[%c0_2, %c0_3] : memref<1x128xf32, #tpu.memory_space<vmem>>, vector<1x128xf32>
    %c0_4 = arith.constant 0 : index
    %c0_5 = arith.constant 0 : index
    %3 = vector.load %arg3[%c0_4, %c0_5] : memref<1x128xf32, #tpu.memory_space<vmem>>, vector<1x128xf32>
    %cst = arith.constant dense<0.000000e+00> : vector<8xf32>
    %4 = vector.multi_reduction <add>, %1, %cst [1] : vector<8x128xf32> to vector<8xf32>
    %5 = vector.shape_cast %4 : vector<8xf32> to vector<8x1xf32>
    %cst_6 = arith.constant 3.200000e+01 : f32
    %6 = vector.broadcast %cst_6 : f32 to vector<8x1xf32>
    %7 = arith.divf %5, %6 : vector<8x1xf32>
    %8 = vector.broadcast %7 : vector<8x1xf32> to vector<8x128xf32>
    %9 = arith.subf %1, %8 : vector<8x128xf32>
    %10 = tpu.iota {dimensions = array<i32: 1>} : vector<8x128xi32>
    %c32_i32 = arith.constant 32 : i32
    %11 = vector.broadcast %c32_i32 : i32 to vector<8x128xi32>
    %12 = arith.cmpi slt, %10, %11 : vector<8x128xi32>
    %13 = arith.mulf %9, %9 : vector<8x128xf32>
    %cst_7 = arith.constant 0.000000e+00 : f32
    %14 = vector.broadcast %cst_7 : f32 to vector<8x128xf32>
    %15 = arith.select %12, %13, %14 : vector<8x128xi1>, vector<8x128xf32>
    %cst_8 = arith.constant dense<0.000000e+00> : vector<8xf32>
    %16 = vector.multi_reduction <add>, %15, %cst_8 [1] : vector<8x128xf32> to vector<8xf32>
    %17 = vector.shape_cast %16 : vector<8xf32> to vector<8x1xf32>
    %cst_9 = arith.constant 3.200000e+01 : f32
    %18 = vector.broadcast %cst_9 : f32 to vector<8x1xf32>
    %19 = arith.divf %17, %18 : vector<8x1xf32>
    %cst_10 = arith.constant 9.99999974E-6 : f32
    %20 = vector.broadcast %cst_10 : f32 to vector<8x1xf32>
    %21 = arith.addf %19, %20 : vector<8x1xf32>
    %22 = math.rsqrt %21 : vector<8x1xf32>
    %23 = vector.broadcast %22 : vector<8x1xf32> to vector<8x128xf32>
    %24 = arith.mulf %9, %23 : vector<8x128xf32>
    %25 = vector.broadcast %2 : vector<1x128xf32> to vector<8x128xf32>
    %26 = arith.mulf %24, %25 : vector<8x128xf32>
    %27 = vector.broadcast %3 : vector<1x128xf32> to vector<8x128xf32>
    %28 = arith.addf %26, %27 : vector<8x128xf32>
    %c0_11 = arith.constant 0 : index
    %c0_12 = arith.constant 0 : index
    %29 = vector.load %arg4[%c0_11, %c0_12] : memref<128x128xf32, #tpu.memory_space<vmem>>, vector<128x128xf32>
    %cst_13 = arith.constant dense<0.000000e+00> : vector<8x128xf32>
    %30 = tpu.matmul %28, %29, %cst_13 {dimension_numbers = #tpu.dot_dimension_numbers<[1], [0], [0], [1], [0, 0, 1, 1], [], []>} : vector<8x128xf32>, vector<128x128xf32>, vector<8x128xf32> -> vector<8x128xf32>
    %c0_14 = arith.constant 0 : index
    %c0_15 = arith.constant 0 : index
    %31 = vector.load %arg5[%c0_14, %c0_15] : memref<1x128xf32, #tpu.memory_space<vmem>>, vector<1x128xf32>
    %32 = vector.broadcast %31 : vector<1x128xf32> to vector<8x128xf32>
    %33 = arith.addf %30, %32 : vector<8x128xf32>
    %cst_16 = arith.constant 5.000000e-01 : f32
    %34 = vector.broadcast %cst_16 : f32 to vector<8x128xf32>
    %35 = arith.mulf %34, %33 : vector<8x128xf32>
    %cst_17 = arith.constant 1.41421354 : f32
    %36 = vector.broadcast %cst_17 : f32 to vector<8x128xf32>
    %37 = arith.divf %33, %36 : vector<8x128xf32>
    %38 = math.erf %37 : vector<8x128xf32>
    %cst_18 = arith.constant 1.000000e+00 : f32
    %39 = vector.broadcast %cst_18 : f32 to vector<8x128xf32>
    %40 = arith.addf %39, %38 : vector<8x128xf32>
    %41 = arith.mulf %35, %40 : vector<8x128xf32>
    %c0_19 = arith.constant 0 : index
    %c0_20 = arith.constant 0 : index
    %42 = vector.load %arg6[%c0_19, %c0_20] : memref<1x128xf32, #tpu.memory_space<vmem>>, vector<1x128xf32>
    %c0_21 = arith.constant 0 : index
    %c0_22 = arith.constant 0 : index
    %43 = vector.load %arg7[%c0_21, %c0_22] : memref<1x128xf32, #tpu.memory_space<vmem>>, vector<1x128xf32>
    %cst_23 = arith.constant dense<0.000000e+00> : vector<8xf32>
    %44 = vector.multi_reduction <add>, %41, %cst_23 [1] : vector<8x128xf32> to vector<8xf32>
    %45 = vector.shape_cast %44 : vector<8xf32> to vector<8x1xf32>
    %cst_24 = arith.constant 6.400000e+01 : f32
    %46 = vector.broadcast %cst_24 : f32 to vector<8x1xf32>
    %47 = arith.divf %45, %46 : vector<8x1xf32>
    %48 = vector.broadcast %47 : vector<8x1xf32> to vector<8x128xf32>
    %49 = arith.subf %41, %48 : vector<8x128xf32>
    %50 = tpu.iota {dimensions = array<i32: 1>} : vector<8x128xi32>
    %c64_i32 = arith.constant 64 : i32
    %51 = vector.broadcast %c64_i32 : i32 to vector<8x128xi32>
    %52 = arith.cmpi slt, %50, %51 : vector<8x128xi32>
    %53 = arith.mulf %49, %49 : vector<8x128xf32>
    %cst_25 = arith.constant 0.000000e+00 : f32
    %54 = vector.broadcast %cst_25 : f32 to vector<8x128xf32>
    %55 = arith.select %52, %53, %54 : vector<8x128xi1>, vector<8x128xf32>
    %cst_26 = arith.constant dense<0.000000e+00> : vector<8xf32>
    %56 = vector.multi_reduction <add>, %55, %cst_26 [1] : vector<8x128xf32> to vector<8xf32>
    %57 = vector.shape_cast %56 : vector<8xf32> to vector<8x1xf32>
    %cst_27 = arith.constant 6.400000e+01 : f32
    %58 = vector.broadcast %cst_27 : f32 to vector<8x1xf32>
    %59 = arith.divf %57, %58 : vector<8x1xf32>
    %cst_28 = arith.constant 9.99999974E-6 : f32
    %60 = vector.broadcast %cst_28 : f32 to vector<8x1xf32>
    %61 = arith.addf %59, %60 : vector<8x1xf32>
    %62 = math.rsqrt %61 : vector<8x1xf32>
    %63 = vector.broadcast %62 : vector<8x1xf32> to vector<8x128xf32>
    %64 = arith.mulf %49, %63 : vector<8x128xf32>
    %65 = vector.broadcast %42 : vector<1x128xf32> to vector<8x128xf32>
    %66 = arith.mulf %64, %65 : vector<8x128xf32>
    %67 = vector.broadcast %43 : vector<1x128xf32> to vector<8x128xf32>
    %68 = arith.addf %66, %67 : vector<8x128xf32>
    %69 = vector.shape_cast %68 : vector<8x128xf32> to vector<1x8x128xf32>
    %70 = vector.extract_strided_slice %69 {offsets = [0, 0, 0], sizes = [1, 1, 128], strides = [1, 1, 1]} : vector<1x8x128xf32> to vector<1x1x128xf32>
    %71 = vector.shape_cast %70 : vector<1x1x128xf32> to vector<1x128xf32>
    %c0_29 = arith.constant 0 : index
    %c0_30 = arith.constant 0 : index
    %72 = vector.load %arg8[%c0_29, %c0_30] : memref<1x128xf32, #tpu.memory_space<vmem>>, vector<1x128xf32>
    %73 = arith.mulf %71, %72 : vector<1x128xf32>
    %cst_31 = arith.constant dense<0.000000e+00> : vector<1xf32>
    %74 = vector.multi_reduction <add>, %73, %cst_31 [1] : vector<1x128xf32> to vector<1xf32>
    %75 = vector.shape_cast %74 : vector<1xf32> to vector<1x1xf32>
    %c0_32 = arith.constant 0 : index
    %c0_33 = arith.constant 0 : index
    %76 = vector.load %arg9[%c0_32, %c0_33] : memref<1x1xf32, #tpu.memory_space<vmem>>, vector<1x1xf32>
    %77 = arith.addf %75, %76 : vector<1x1xf32>
    %78 = math.tanh %77 : vector<1x1xf32>
    %cst_34 = arith.constant 0.000000e+00 : f32
    %79 = vector.broadcast %cst_34 : f32 to vector<1x1xf32>
    %80 = arith.cmpf oge, %78, %79 : vector<1x1xf32>
    %81 = tpu.transpose %69, [1, 0, 2] : vector<1x8x128xf32> -> vector<8x1x128xf32>
    %82 = vector.shape_cast %81 : vector<8x1x128xf32> to vector<8x128xf32>
    %c0_35 = arith.constant 0 : index
    %c0_36 = arith.constant 0 : index
    %83 = vector.load %arg10[%c0_35, %c0_36] : memref<8x8xf32, #tpu.memory_space<vmem>>, vector<8x8xf32>
    %cst_37 = arith.constant dense<0.000000e+00> : vector<8x128xf32>
    %84 = tpu.matmul %83, %82, %cst_37 {dimension_numbers = #tpu.dot_dimension_numbers<[1], [0], [0], [1], [0, 0, 1, 1], [], []>} : vector<8x8xf32>, vector<8x128xf32>, vector<8x128xf32> -> vector<8x128xf32>
    %85 = vector.shape_cast %84 : vector<8x128xf32> to vector<8x1x128xf32>
    %c0_38 = arith.constant 0 : index
    %c0_39 = arith.constant 0 : index
    %86 = vector.load %arg12[%c0_38, %c0_39] : memref<8x8xf32, #tpu.memory_space<vmem>>, vector<8x8xf32>
    %cst_40 = arith.constant dense<0.000000e+00> : vector<8x128xf32>
    %87 = tpu.matmul %86, %82, %cst_40 {dimension_numbers = #tpu.dot_dimension_numbers<[1], [0], [0], [1], [0, 0, 1, 1], [], []>} : vector<8x8xf32>, vector<8x128xf32>, vector<8x128xf32> -> vector<8x128xf32>
    %88 = vector.shape_cast %87 : vector<8x128xf32> to vector<8x1x128xf32>
    %89 = vector.shape_cast %80 : vector<1x1xi1> to vector<1x1x1xi1>
    %90 = vector.shape_cast %89 : vector<1x1x1xi1> to vector<1x1x1xi1>
    %91 = vector.broadcast %90 : vector<1x1x1xi1> to vector<8x1x128xi1>
    %92 = arith.select %91, %88, %85 : vector<8x1x128xi1>, vector<8x1x128xf32>
    %93 = vector.shape_cast %80 : vector<1x1xi1> to vector<1x1x1xi1>
    %c0_41 = arith.constant 0 : index
    %c0_42 = arith.constant 0 : index
    %94 = vector.load %arg13[%c0_41, %c0_42] : memref<8x1xf32, #tpu.memory_space<vmem>>, vector<8x1xf32>
    %95 = vector.shape_cast %94 : vector<8x1xf32> to vector<1x8x1xf32>
    %c0_43 = arith.constant 0 : index
    %c0_44 = arith.constant 0 : index
    %96 = vector.load %arg11[%c0_43, %c0_44] : memref<8x1xf32, #tpu.memory_space<vmem>>, vector<8x1xf32>
    %97 = vector.shape_cast %96 : vector<8x1xf32> to vector<1x8x1xf32>
    %98 = vector.shape_cast %93 : vector<1x1x1xi1> to vector<1x1x1xi1>
    %99 = vector.broadcast %98 : vector<1x1x1xi1> to vector<1x8x1xi1>
    %100 = arith.select %99, %95, %97 : vector<1x8x1xi1>, vector<1x8x1xf32>
    %101 = tpu.transpose %92, [1, 0, 2] : vector<8x1x128xf32> -> vector<1x8x128xf32>
    %102 = vector.broadcast %100 : vector<1x8x1xf32> to vector<1x8x128xf32>
    %103 = arith.addf %101, %102 : vector<1x8x128xf32>
    %104 = vector.shape_cast %41 : vector<8x128xf32> to vector<1x8x128xf32>
    %105 = arith.addf %103, %104 : vector<1x8x128xf32>
    %cst_45 = arith.constant 5.000000e-01 : f32
    %106 = vector.broadcast %cst_45 : f32 to vector<1x8x128xf32>
    %107 = arith.mulf %106, %105 : vector<1x8x128xf32>
    %cst_46 = arith.constant 1.41421354 : f32
    %108 = vector.broadcast %cst_46 : f32 to vector<1x8x128xf32>
    %109 = arith.divf %105, %108 : vector<1x8x128xf32>
    %110 = math.erf %109 : vector<1x8x128xf32>
    %cst_47 = arith.constant 1.000000e+00 : f32
    %111 = vector.broadcast %cst_47 : f32 to vector<1x8x128xf32>
    %112 = arith.addf %111, %110 : vector<1x8x128xf32>
    %113 = arith.mulf %107, %112 : vector<1x8x128xf32>
    %114 = vector.shape_cast %113 : vector<1x8x128xf32> to vector<8x128xf32>
    %c0_48 = arith.constant 0 : index
    %c0_49 = arith.constant 0 : index
    %115 = vector.load %arg14[%c0_48, %c0_49] : memref<128x128xf32, #tpu.memory_space<vmem>>, vector<128x128xf32>
    %cst_50 = arith.constant dense<0.000000e+00> : vector<8x128xf32>
    %116 = tpu.matmul %114, %115, %cst_50 {dimension_numbers = #tpu.dot_dimension_numbers<[1], [0], [0], [1], [0, 0, 1, 1], [], []>} : vector<8x128xf32>, vector<128x128xf32>, vector<8x128xf32> -> vector<8x128xf32>
    %c0_51 = arith.constant 0 : index
    %c0_52 = arith.constant 0 : index
    %117 = vector.load %arg15[%c0_51, %c0_52] : memref<1x128xf32, #tpu.memory_space<vmem>>, vector<1x128xf32>
    %118 = vector.broadcast %117 : vector<1x128xf32> to vector<8x128xf32>
    %119 = arith.addf %116, %118 : vector<8x128xf32>
    %120 = vector.shape_cast %119 : vector<8x128xf32> to vector<1x8x128xf32>
    %121 = arith.addf %0, %120 : vector<1x8x128xf32>
    %c0_53 = arith.constant 0 : index
    %c0_54 = arith.constant 0 : index
    %c0_55 = arith.constant 0 : index
    %122 = vector.load %arg16[%c0_53, %c0_54, %c0_55] : memref<1x8x128xf32, #tpu.memory_space<vmem>>, vector<1x8x128xf32>
    tpu.vector_store %arg16[%c0_53, %c0_54, %c0_55], %121 {strides = array<i32>} : memref<1x8x128xf32, #tpu.memory_space<vmem>>, vector<1x8x128xf32>,
    return
  }
  func.func @transform_0(%arg0: i32) -> (i32, i32, i32) {
    %c0_i32 = arith.constant 0 : i32
    %c0_i32_0 = arith.constant 0 : i32
    %c0_i32_1 = arith.constant 0 : i32
    return %arg0, %c0_i32, %c0_i32_0 : i32, i32, i32
  }
  func.func @transform_1(%arg0: i32) -> (i32, i32) {
    %c0_i32 = arith.constant 0 : i32
    %c0_i32_0 = arith.constant 0 : i32
    %c0_i32_1 = arith.constant 0 : i32
    return %c0_i32, %c0_i32_0 : i32, i32
  }
  func.func @transform_2(%arg0: i32) -> (i32, i32) {
    %c0_i32 = arith.constant 0 : i32
    %c0_i32_0 = arith.constant 0 : i32
    %c0_i32_1 = arith.constant 0 : i32
    return %c0_i32, %c0_i32_0 : i32, i32
  }
  func.func @transform_3(%arg0: i32) -> (i32, i32) {
    %c0_i32 = arith.constant 0 : i32
    %c0_i32_0 = arith.constant 0 : i32
    %c0_i32_1 = arith.constant 0 : i32
    return %c0_i32, %c0_i32_0 : i32, i32
  }
  func.func @transform_4(%arg0: i32) -> (i32, i32) {
    %c0_i32 = arith.constant 0 : i32
    %c0_i32_0 = arith.constant 0 : i32
    %c0_i32_1 = arith.constant 0 : i32
    return %c0_i32, %c0_i32_0 : i32, i32
  }
  func.func @transform_5(%arg0: i32) -> (i32, i32) {
    %c0_i32 = arith.constant 0 : i32
    %c0_i32_0 = arith.constant 0 : i32
    %c0_i32_1 = arith.constant 0 : i32
    return %c0_i32, %c0_i32_0 : i32, i32
  }
  func.func @transform_6(%arg0: i32) -> (i32, i32) {
    %c0_i32 = arith.constant 0 : i32
    %c0_i32_0 = arith.constant 0 : i32
    %c0_i32_1 = arith.constant 0 : i32
    return %c0_i32, %c0_i32_0 : i32, i32
  }
  func.func @transform_7(%arg0: i32) -> (i32, i32) {
    %c0_i32 = arith.constant 0 : i32
    %c0_i32_0 = arith.constant 0 : i32
    %c0_i32_1 = arith.constant 0 : i32
    return %c0_i32, %c0_i32_0 : i32, i32
  }
  func.func @transform_8(%arg0: i32) -> (i32, i32) {
    %c0_i32 = arith.constant 0 : i32
    %c0_i32_0 = arith.constant 0 : i32
    %c0_i32_1 = arith.constant 0 : i32
    return %c0_i32, %c0_i32_0 : i32, i32
  }
  func.func @transform_9(%arg0: i32) -> (i32, i32) {
    %c0_i32 = arith.constant 0 : i32
    %c0_i32_0 = arith.constant 0 : i32
    %c0_i32_1 = arith.constant 0 : i32
    return %c0_i32, %c0_i32_0 : i32, i32
  }
  func.func @transform_10(%arg0: i32) -> (i32, i32) {
    %c0_i32 = arith.constant 0 : i32
    %c0_i32_0 = arith.constant 0 : i32
    %c0_i32_1 = arith.constant 0 : i32
    return %c0_i32, %c0_i32_0 : i32, i32
  }
  func.func @transform_11(%arg0: i32) -> (i32, i32) {
    %c0_i32 = arith.constant 0 : i32
    %c0_i32_0 = arith.constant 0 : i32
    %c0_i32_1 = arith.constant 0 : i32
    return %c0_i32, %c0_i32_0 : i32, i32
  }
  func.func @transform_12(%arg0: i32) -> (i32, i32) {
    %c0_i32 = arith.constant 0 : i32
    %c0_i32_0 = arith.constant 0 : i32
    %c0_i32_1 = arith.constant 0 : i32
    return %c0_i32, %c0_i32_0 : i32, i32
  }
  func.func @transform_13(%arg0: i32) -> (i32, i32) {
    %c0_i32 = arith.constant 0 : i32
    %c0_i32_0 = arith.constant 0 : i32
    %c0_i32_1 = arith.constant 0 : i32
    return %c0_i32, %c0_i32_0 : i32, i32
  }
  func.func @transform_14(%arg0: i32) -> (i32, i32) {
    %c0_i32 = arith.constant 0 : i32
    %c0_i32_0 = arith.constant 0 : i32
    %c0_i32_1 = arith.constant 0 : i32
    return %c0_i32, %c0_i32_0 : i32, i32
  }
  func.func @transform_15(%arg0: i32) -> (i32, i32, i32) {
    %c0_i32 = arith.constant 0 : i32
    %c0_i32_0 = arith.constant 0 : i32
    %c0_i32_1 = arith.constant 0 : i32
    return %arg0, %c0_i32, %c0_i32_0 : i32, i32, i32
  }
}

module attributes {stable_mosaic.version = 11 : i64} {
  func.func @gmlp_cls_kernel(%arg0: i32, %arg1: memref<1x8x128xf32, #tpu.memory_space<vmem>>, %arg2: memref<1x128xf32, #tpu.memory_space<vmem>>, %arg3: memref<1x128xf32, #tpu.memory_space<vmem>>, %arg4: memref<128x128xf32, #tpu.memory_space<vmem>>, %arg5: memref<1x128xf32, #tpu.memory_space<vmem>>, %arg6: memref<1x128xf32, #tpu.memory_space<vmem>>, %arg7: memref<1x128xf32, #tpu.memory_space<vmem>>, %arg8: memref<1x128xf32, #tpu.memory_space<vmem>>, %arg9: memref<1x1xf32, #tpu.memory_space<vmem>>, %arg10: memref<8x8xf32, #tpu.memory_space<vmem>>, %arg11: memref<8x1xf32, #tpu.memory_space<vmem>>, %arg12: memref<8x8xf32, #tpu.memory_space<vmem>>, %arg13: memref<8x1xf32, #tpu.memory_space<vmem>>, %arg14: memref<128x128xf32, #tpu.memory_space<vmem>>, %arg15: memref<1x128xf32, #tpu.memory_space<vmem>>, %arg16: memref<1x8x128xf32, #tpu.memory_space<vmem>>) attributes {dimension_semantics = [#tpu.dimension_semantics<parallel>], iteration_bounds = array<i64: 2>, scalar_prefetch = 0 : i64, scratch_operands = 0 : i64, tpu.core_type = #tpu.core_type<tc>, window_params = [{transform_indices = @transform_0, window_bounds = array<i64: 1, 8, 128>}, {pipeline_mode = #tpu.pipeline_mode<synchronous>, transform_indices = @transform_1, window_bounds = array<i64: 1, 128>}, {pipeline_mode = #tpu.pipeline_mode<synchronous>, transform_indices = @transform_2, window_bounds = array<i64: 1, 128>}, {pipeline_mode = #tpu.pipeline_mode<synchronous>, transform_indices = @transform_3, window_bounds = array<i64: 128, 128>}, {pipeline_mode = #tpu.pipeline_mode<synchronous>, transform_indices = @transform_4, window_bounds = array<i64: 1, 128>}, {pipeline_mode = #tpu.pipeline_mode<synchronous>, transform_indices = @transform_5, window_bounds = array<i64: 1, 128>}, {pipeline_mode = #tpu.pipeline_mode<synchronous>, transform_indices = @transform_6, window_bounds = array<i64: 1, 128>}, {pipeline_mode = #tpu.pipeline_mode<synchronous>, transform_indices = @transform_7, window_bounds = array<i64: 1, 128>}, {pipeline_mode = #tpu.pipeline_mode<synchronous>, transform_indices = @transform_8, window_bounds = array<i64: 1, 1>}, {pipeline_mode = #tpu.pipeline_mode<synchronous>, transform_indices = @transform_9, window_bounds = array<i64: 8, 8>}, {pipeline_mode = #tpu.pipeline_mode<synchronous>, transform_indices = @transform_10, window_bounds = array<i64: 8, 1>}, {pipeline_mode = #tpu.pipeline_mode<synchronous>, transform_indices = @transform_11, window_bounds = array<i64: 8, 8>}, {pipeline_mode = #tpu.pipeline_mode<synchronous>, transform_indices = @transform_12, window_bounds = array<i64: 8, 1>}, {pipeline_mode = #tpu.pipeline_mode<synchronous>, transform_indices = @transform_13, window_bounds = array<i64: 128, 128>}, {pipeline_mode = #tpu.pipeline_mode<synchronous>, transform_indices = @transform_14, window_bounds = array<i64: 1, 128>}, {transform_indices = @transform_15, window_bounds = array<i64: 1, 8, 128>}]} {
    %c0 = arith.constant 0 : index
    %c0_0 = arith.constant 0 : index
    %c0_1 = arith.constant 0 : index
    %0 = vector.load %arg1[%c0, %c0_0, %c0_1] : memref<1x8x128xf32, #tpu.memory_space<vmem>>, vector<1x8x128xf32>
    %1 = vector.shape_cast %0 : vector<1x8x128xf32> to vector<8x128xf32>
    %c0_2 = arith.constant 0 : index
    %c0_3 = arith.constant 0 : index
    %2 = vector.load %arg2[%c0_2, %c0_3] : memref<1x128xf32, #tpu.memory_space<vmem>>, vector<1x128xf32>
    %c0_4 = arith.constant 0 : index
    %c0_5 = arith.constant 0 : index
    %3 = vector.load %arg3[%c0_4, %c0_5] : memref<1x128xf32, #tpu.memory_space<vmem>>, vector<1x128xf32>
    %cst = arith.constant dense<0.000000e+00> : vector<8xf32>
    %4 = vector.multi_reduction <add>, %1, %cst [1] : vector<8x128xf32> to vector<8xf32>
    %5 = vector.shape_cast %4 : vector<8xf32> to vector<8x1xf32>
    %cst_6 = arith.constant 3.200000e+01 : f32
    %6 = vector.broadcast %cst_6 : f32 to vector<8x1xf32>
    %7 = arith.divf %5, %6 : vector<8x1xf32>
    %8 = vector.broadcast %7 : vector<8x1xf32> to vector<8x128xf32>
    %9 = arith.subf %1, %8 : vector<8x128xf32>
    %10 = tpu.iota {dimensions = array<i32: 1>} : vector<8x128xi32>
    %c32_i32 = arith.constant 32 : i32
    %11 = vector.broadcast %c32_i32 : i32 to vector<8x128xi32>
    %12 = arith.cmpi slt, %10, %11 : vector<8x128xi32>
    %13 = arith.mulf %9, %9 : vector<8x128xf32>
    %cst_7 = arith.constant 0.000000e+00 : f32
    %14 = vector.broadcast %cst_7 : f32 to vector<8x128xf32>
    %15 = arith.select %12, %13, %14 : vector<8x128xi1>, vector<8x128xf32>
    %cst_8 = arith.constant dense<0.000000e+00> : vector<8xf32>
    %16 = vector.multi_reduction <add>, %15, %cst_8 [1] : vector<8x128xf32> to vector<8xf32>
    %17 = vector.shape_cast %16 : vector<8xf32> to vector<8x1xf32>
    %cst_9 = arith.constant 3.200000e+01 : f32
    %18 = vector.broadcast %cst_9 : f32 to vector<8x1xf32>
    %19 = arith.divf %17, %18 : vector<8x1xf32>
    %cst_10 = arith.constant 9.99999974E-6 : f32
    %20 = vector.broadcast %cst_10 : f32 to vector<8x1xf32>
    %21 = arith.addf %19, %20 : vector<8x1xf32>
    %22 = math.rsqrt %21 : vector<8x1xf32>
    %23 = vector.broadcast %22 : vector<8x1xf32> to vector<8x128xf32>
    %24 = arith.mulf %9, %23 : vector<8x128xf32>
    %25 = vector.broadcast %2 : vector<1x128xf32> to vector<8x128xf32>
    %26 = arith.mulf %24, %25 : vector<8x128xf32>
    %27 = vector.broadcast %3 : vector<1x128xf32> to vector<8x128xf32>
    %28 = arith.addf %26, %27 : vector<8x128xf32>
    %c0_11 = arith.constant 0 : index
    %c0_12 = arith.constant 0 : index
    %29 = vector.load %arg4[%c0_11, %c0_12] : memref<128x128xf32, #tpu.memory_space<vmem>>, vector<128x128xf32>
    %cst_13 = arith.constant dense<0.000000e+00> : vector<8x128xf32>
    %30 = tpu.matmul %28, %29, %cst_13 {dimension_numbers = #tpu.dot_dimension_numbers<[1], [0], [0], [1], [0, 0, 1, 1], [], []>} : vector<8x128xf32>, vector<128x128xf32>, vector<8x128xf32> -> vector<8x128xf32>
    %c0_14 = arith.constant 0 : index
    %c0_15 = arith.constant 0 : index
    %31 = vector.load %arg5[%c0_14, %c0_15] : memref<1x128xf32, #tpu.memory_space<vmem>>, vector<1x128xf32>
    %32 = vector.broadcast %31 : vector<1x128xf32> to vector<8x128xf32>
    %33 = arith.addf %30, %32 : vector<8x128xf32>
    %cst_16 = arith.constant 5.000000e-01 : f32
    %34 = vector.broadcast %cst_16 : f32 to vector<8x128xf32>
    %35 = arith.mulf %34, %33 : vector<8x128xf32>
    %cst_17 = arith.constant 1.41421354 : f32
    %36 = vector.broadcast %cst_17 : f32 to vector<8x128xf32>
    %37 = arith.divf %33, %36 : vector<8x128xf32>
    %38 = math.erf %37 : vector<8x128xf32>
    %cst_18 = arith.constant 1.000000e+00 : f32
    %39 = vector.broadcast %cst_18 : f32 to vector<8x128xf32>
    %40 = arith.addf %39, %38 : vector<8x128xf32>
    %41 = arith.mulf %35, %40 : vector<8x128xf32>
    %c0_19 = arith.constant 0 : index
    %c0_20 = arith.constant 0 : index
    %42 = vector.load %arg6[%c0_19, %c0_20] : memref<1x128xf32, #tpu.memory_space<vmem>>, vector<1x128xf32>
    %c0_21 = arith.constant 0 : index
    %c0_22 = arith.constant 0 : index
    %43 = vector.load %arg7[%c0_21, %c0_22] : memref<1x128xf32, #tpu.memory_space<vmem>>, vector<1x128xf32>
    %cst_23 = arith.constant dense<0.000000e+00> : vector<8xf32>
    %44 = vector.multi_reduction <add>, %41, %cst_23 [1] : vector<8x128xf32> to vector<8xf32>
    %45 = vector.shape_cast %44 : vector<8xf32> to vector<8x1xf32>
    %cst_24 = arith.constant 6.400000e+01 : f32
    %46 = vector.broadcast %cst_24 : f32 to vector<8x1xf32>
    %47 = arith.divf %45, %46 : vector<8x1xf32>
    %48 = vector.broadcast %47 : vector<8x1xf32> to vector<8x128xf32>
    %49 = arith.subf %41, %48 : vector<8x128xf32>
    %50 = tpu.iota {dimensions = array<i32: 1>} : vector<8x128xi32>
    %c64_i32 = arith.constant 64 : i32
    %51 = vector.broadcast %c64_i32 : i32 to vector<8x128xi32>
    %52 = arith.cmpi slt, %50, %51 : vector<8x128xi32>
    %53 = arith.mulf %49, %49 : vector<8x128xf32>
    %cst_25 = arith.constant 0.000000e+00 : f32
    %54 = vector.broadcast %cst_25 : f32 to vector<8x128xf32>
    %55 = arith.select %52, %53, %54 : vector<8x128xi1>, vector<8x128xf32>
    %cst_26 = arith.constant dense<0.000000e+00> : vector<8xf32>
    %56 = vector.multi_reduction <add>, %55, %cst_26 [1] : vector<8x128xf32> to vector<8xf32>
    %57 = vector.shape_cast %56 : vector<8xf32> to vector<8x1xf32>
    %cst_27 = arith.constant 6.400000e+01 : f32
    %58 = vector.broadcast %cst_27 : f32 to vector<8x1xf32>
    %59 = arith.divf %57, %58 : vector<8x1xf32>
    %cst_28 = arith.constant 9.99999974E-6 : f32
    %60 = vector.broadcast %cst_28 : f32 to vector<8x1xf32>
    %61 = arith.addf %59, %60 : vector<8x1xf32>
    %62 = math.rsqrt %61 : vector<8x1xf32>
    %63 = vector.broadcast %62 : vector<8x1xf32> to vector<8x128xf32>
    %64 = arith.mulf %49, %63 : vector<8x128xf32>
    %65 = vector.broadcast %42 : vector<1x128xf32> to vector<8x128xf32>
    %66 = arith.mulf %64, %65 : vector<8x128xf32>
    %67 = vector.broadcast %43 : vector<1x128xf32> to vector<8x128xf32>
    %68 = arith.addf %66, %67 : vector<8x128xf32>
    %69 = vector.shape_cast %68 : vector<8x128xf32> to vector<1x8x128xf32>
    %70 = vector.extract_strided_slice %69 {offsets = [0, 0, 0], sizes = [1, 1, 128], strides = [1, 1, 1]} : vector<1x8x128xf32> to vector<1x1x128xf32>
    %71 = vector.shape_cast %70 : vector<1x1x128xf32> to vector<1x128xf32>
    %c0_29 = arith.constant 0 : index
    %c0_30 = arith.constant 0 : index
    %72 = vector.load %arg8[%c0_29, %c0_30] : memref<1x128xf32, #tpu.memory_space<vmem>>, vector<1x128xf32>
    %73 = arith.mulf %71, %72 : vector<1x128xf32>
    %cst_31 = arith.constant dense<0.000000e+00> : vector<1xf32>
    %74 = vector.multi_reduction <add>, %73, %cst_31 [1] : vector<1x128xf32> to vector<1xf32>
    %75 = vector.shape_cast %74 : vector<1xf32> to vector<1x1xf32>
    %c0_32 = arith.constant 0 : index
    %c0_33 = arith.constant 0 : index
    %76 = vector.load %arg9[%c0_32, %c0_33] : memref<1x1xf32, #tpu.memory_space<vmem>>, vector<1x1xf32>
    %77 = arith.addf %75, %76 : vector<1x1xf32>
    %78 = math.tanh %77 : vector<1x1xf32>
    %cst_34 = arith.constant 0.000000e+00 : f32
    %79 = vector.broadcast %cst_34 : f32 to vector<1x1xf32>
    %80 = arith.cmpf oge, %78, %79 : vector<1x1xf32>
    %81 = tpu.transpose %69, [1, 0, 2] : vector<1x8x128xf32> -> vector<8x1x128xf32>
    %82 = vector.shape_cast %81 : vector<8x1x128xf32> to vector<8x128xf32>
    %c0_35 = arith.constant 0 : index
    %c0_36 = arith.constant 0 : index
    %83 = vector.load %arg10[%c0_35, %c0_36] : memref<8x8xf32, #tpu.memory_space<vmem>>, vector<8x8xf32>
    %cst_37 = arith.constant dense<0.000000e+00> : vector<8x128xf32>
    %84 = tpu.matmul %83, %82, %cst_37 {dimension_numbers = #tpu.dot_dimension_numbers<[1], [0], [0], [1], [0, 0, 1, 1], [], []>} : vector<8x8xf32>, vector<8x128xf32>, vector<8x128xf32> -> vector<8x128xf32>
    %85 = vector.shape_cast %84 : vector<8x128xf32> to vector<8x1x128xf32>
    %c0_38 = arith.constant 0 : index
    %c0_39 = arith.constant 0 : index
    %86 = vector.load %arg12[%c0_38, %c0_39] : memref<8x8xf32, #tpu.memory_space<vmem>>, vector<8x8xf32>
    %cst_40 = arith.constant dense<0.000000e+00> : vector<8x128xf32>
    %87 = tpu.matmul %86, %82, %cst_40 {dimension_numbers = #tpu.dot_dimension_numbers<[1], [0], [0], [1], [0, 0, 1, 1], [], []>} : vector<8x8xf32>, vector<8x128xf32>, vector<8x128xf32> -> vector<8x128xf32>
    %88 = vector.shape_cast %87 : vector<8x128xf32> to vector<8x1x128xf32>
    %89 = vector.shape_cast %80 : vector<1x1xi1> to vector<1x1x1xi1>
    %90 = vector.shape_cast %89 : vector<1x1x1xi1> to vector<1x1x1xi1>
    %91 = vector.broadcast %90 : vector<1x1x1xi1> to vector<8x1x128xi1>
    %92 = arith.select %91, %88, %85 : vector<8x1x128xi1>, vector<8x1x128xf32>
    %93 = vector.shape_cast %80 : vector<1x1xi1> to vector<1x1x1xi1>
    %c0_41 = arith.constant 0 : index
    %c0_42 = arith.constant 0 : index
    %94 = vector.load %arg13[%c0_41, %c0_42] : memref<8x1xf32, #tpu.memory_space<vmem>>, vector<8x1xf32>
    %95 = vector.shape_cast %94 : vector<8x1xf32> to vector<1x8x1xf32>
    %c0_43 = arith.constant 0 : index
    %c0_44 = arith.constant 0 : index
    %96 = vector.load %arg11[%c0_43, %c0_44] : memref<8x1xf32, #tpu.memory_space<vmem>>, vector<8x1xf32>
    %97 = vector.shape_cast %96 : vector<8x1xf32> to vector<1x8x1xf32>
    %98 = vector.shape_cast %93 : vector<1x1x1xi1> to vector<1x1x1xi1>
    %99 = vector.broadcast %98 : vector<1x1x1xi1> to vector<1x8x1xi1>
    %100 = arith.select %99, %95, %97 : vector<1x8x1xi1>, vector<1x8x1xf32>
    %101 = tpu.transpose %92, [1, 0, 2] : vector<8x1x128xf32> -> vector<1x8x128xf32>
    %102 = vector.broadcast %100 : vector<1x8x1xf32> to vector<1x8x128xf32>
    %103 = arith.addf %101, %102 : vector<1x8x128xf32>
    %104 = vector.shape_cast %41 : vector<8x128xf32> to vector<1x8x128xf32>
    %105 = arith.addf %103, %104 : vector<1x8x128xf32>
    %cst_45 = arith.constant 5.000000e-01 : f32
    %106 = vector.broadcast %cst_45 : f32 to vector<1x8x128xf32>
    %107 = arith.mulf %106, %105 : vector<1x8x128xf32>
    %cst_46 = arith.constant 1.41421354 : f32
    %108 = vector.broadcast %cst_46 : f32 to vector<1x8x128xf32>
    %109 = arith.divf %105, %108 : vector<1x8x128xf32>
    %110 = math.erf %109 : vector<1x8x128xf32>
    %cst_47 = arith.constant 1.000000e+00 : f32
    %111 = vector.broadcast %cst_47 : f32 to vector<1x8x128xf32>
    %112 = arith.addf %111, %110 : vector<1x8x128xf32>
    %113 = arith.mulf %107, %112 : vector<1x8x128xf32>
    %114 = vector.shape_cast %113 : vector<1x8x128xf32> to vector<8x128xf32>
    %c0_48 = arith.constant 0 : index
    %c0_49 = arith.constant 0 : index
    %115 = vector.load %arg14[%c0_48, %c0_49] : memref<128x128xf32, #tpu.memory_space<vmem>>, vector<128x128xf32>
    %cst_50 = arith.constant dense<0.000000e+00> : vector<8x128xf32>
    %116 = tpu.matmul %114, %115, %cst_50 {dimension_numbers = #tpu.dot_dimension_numbers<[1], [0], [0], [1], [0, 0, 1, 1], [], []>} : vector<8x128xf32>, vector<128x128xf32>, vector<8x128xf32> -> vector<8x128xf32>
    %c0_51 = arith.constant 0 : index
    %c0_52 = arith.constant 0 : index
    %117 = vector.load %arg15[%c0_51, %c0_52] : memref<1x128xf32, #tpu.memory_space<vmem>>, vector<1x128xf32>
    %118 = vector.broadcast %117 : vector<1x128xf32> to vector<8x128xf32>
    %119 = arith.addf %116, %118 : vector<8x128xf32>
    %120 = vector.shape_cast %119 : vector<8x128xf32> to vector<1x8x128xf32>
    %121 = arith.addf %0, %120 : vector<1x8x128xf32>
    %c0_53 = arith.constant 0 : index
    %c0_54 = arith.constant 0 : index
    %c0_55 = arith.constant 0 : index
    %122 = vector.load %arg16[%c0_53, %c0_54, %c0_55] : memref<1x8x128xf32, #tpu.memory_space<vmem>>, vector<1x8x128xf32>
    tpu.vector_store %arg16[%c0_53, %c0_54, %c0_55], %121 {strides = array<i32>} : memref<1x8x128xf32, #tpu.memory_space<vmem>>, vector<1x8x128xf32>,
    return
  }
  func.func @transform_0(%arg0: i32) -> (i32, i32, i32) {
    %c0_i32 = arith.constant 0 : i32
    %c0_i32_0 = arith.constant 0 : i32
    %c0_i32_1 = arith.constant 0 : i32
    return %arg0, %c0_i32, %c0_i32_0 : i32, i32, i32
  }
  func.func @transform_1(%arg0: i32) -> (i32, i32) {
    %c0_i32 = arith.constant 0 : i32
    %c0_i32_0 = arith.constant 0 : i32
    %c0_i32_1 = arith.constant 0 : i32
    return %c0_i32, %c0_i32_0 : i32, i32
  }
  func.func @transform_2(%arg0: i32) -> (i32, i32) {
    %c0_i32 = arith.constant 0 : i32
    %c0_i32_0 = arith.constant 0 : i32
    %c0_i32_1 = arith.constant 0 : i32
    return %c0_i32, %c0_i32_0 : i32, i32
  }
  func.func @transform_3(%arg0: i32) -> (i32, i32) {
    %c0_i32 = arith.constant 0 : i32
    %c0_i32_0 = arith.constant 0 : i32
    %c0_i32_1 = arith.constant 0 : i32
    return %c0_i32, %c0_i32_0 : i32, i32
  }
  func.func @transform_4(%arg0: i32) -> (i32, i32) {
    %c0_i32 = arith.constant 0 : i32
    %c0_i32_0 = arith.constant 0 : i32
    %c0_i32_1 = arith.constant 0 : i32
    return %c0_i32, %c0_i32_0 : i32, i32
  }
  func.func @transform_5(%arg0: i32) -> (i32, i32) {
    %c0_i32 = arith.constant 0 : i32
    %c0_i32_0 = arith.constant 0 : i32
    %c0_i32_1 = arith.constant 0 : i32
    return %c0_i32, %c0_i32_0 : i32, i32
  }
  func.func @transform_6(%arg0: i32) -> (i32, i32) {
    %c0_i32 = arith.constant 0 : i32
    %c0_i32_0 = arith.constant 0 : i32
    %c0_i32_1 = arith.constant 0 : i32
    return %c0_i32, %c0_i32_0 : i32, i32
  }
  func.func @transform_7(%arg0: i32) -> (i32, i32) {
    %c0_i32 = arith.constant 0 : i32
    %c0_i32_0 = arith.constant 0 : i32
    %c0_i32_1 = arith.constant 0 : i32
    return %c0_i32, %c0_i32_0 : i32, i32
  }
  func.func @transform_8(%arg0: i32) -> (i32, i32) {
    %c0_i32 = arith.constant 0 : i32
    %c0_i32_0 = arith.constant 0 : i32
    %c0_i32_1 = arith.constant 0 : i32
    return %c0_i32, %c0_i32_0 : i32, i32
  }
  func.func @transform_9(%arg0: i32) -> (i32, i32) {
    %c0_i32 = arith.constant 0 : i32
    %c0_i32_0 = arith.constant 0 : i32
    %c0_i32_1 = arith.constant 0 : i32
    return %c0_i32, %c0_i32_0 : i32, i32
  }
  func.func @transform_10(%arg0: i32) -> (i32, i32) {
    %c0_i32 = arith.constant 0 : i32
    %c0_i32_0 = arith.constant 0 : i32
    %c0_i32_1 = arith.constant 0 : i32
    return %c0_i32, %c0_i32_0 : i32, i32
  }
  func.func @transform_11(%arg0: i32) -> (i32, i32) {
    %c0_i32 = arith.constant 0 : i32
    %c0_i32_0 = arith.constant 0 : i32
    %c0_i32_1 = arith.constant 0 : i32
    return %c0_i32, %c0_i32_0 : i32, i32
  }
  func.func @transform_12(%arg0: i32) -> (i32, i32) {
    %c0_i32 = arith.constant 0 : i32
    %c0_i32_0 = arith.constant 0 : i32
    %c0_i32_1 = arith.constant 0 : i32
    return %c0_i32, %c0_i32_0 : i32, i32
  }
  func.func @transform_13(%arg0: i32) -> (i32, i32) {
    %c0_i32 = arith.constant 0 : i32
    %c0_i32_0 = arith.constant 0 : i32
    %c0_i32_1 = arith.constant 0 : i32
    return %c0_i32, %c0_i32_0 : i32, i32
  }
  func.func @transform_14(%arg0: i32) -> (i32, i32) {
    %c0_i32 = arith.constant 0 : i32
    %c0_i32_0 = arith.constant 0 : i32
    %c0_i32_1 = arith.constant 0 : i32
    return %c0_i32, %c0_i32_0 : i32, i32
  }
  func.func @transform_15(%arg0: i32) -> (i32, i32, i32) {
    %c0_i32 = arith.constant 0 : i32
    %c0_i32_0 = arith.constant 0 : i32
    %c0_i32_1 = arith.constant 0 : i32
    return %arg0, %c0_i32, %c0_i32_0 : i32, i32, i32
  }
}

</mosaic_0001>

<bundles_post_ra>
// kernel: tpu_custom_call.1
= control target key start
LH: loop header
LB: loop body
LE: loop exit
PB: predicated region body
PF: predicated region fallthrough
CT: control target
= control target key end

     0   :  { %s2424_s0 = inlined_call_operand.vmem [shape: f32[2,8,128], index: 0, kind: input, shape index: {}]   ;;  %s2425_s1 = inlined_call_operand.hbm [shape: f32[1,128], index: 1, kind: input, shape index: {}]   ;;  %s2426_s2 = inlined_call_operand.hbm [shape: f32[1,128], index: 2, kind: input, shape index: {}]   ;;  %s2427_s3 = inlined_call_operand.hbm [shape: f32[128,128], index: 3, kind: input, shape index: {}]   ;;  %s2428_s4 = inlined_call_operand.hbm [shape: f32[1,128], index: 4, kind: input, shape index: {}]   ;;  %s2429_s5 = inlined_call_operand.hbm [shape: f32[1,128], index: 5, kind: input, shape index: {}]   ;;  %s2430_s6 = inlined_call_operand.hbm [shape: f32[1,128], index: 6, kind: input, shape index: {}]   ;;  %s2431_s7 = inlined_call_operand.hbm [shape: f32[1,128], index: 7, kind: input, shape index: {}]   ;;  %s2432_s8 = inlined_call_operand.<no memory space> [shape: f32[1,1], index: 8, kind: input, shape index: {}]   ;;  %s2433_s9 = inlined_call_operand.vmem [shape: f32[8,8], index: 9, kind: input, shape index: {}]   ;;  %s2434_s10 = inlined_call_operand.vmem [shape: f32[8,1], index: 10, kind: input, shape index: {}]   ;;  %s2435_s11 = inlined_call_operand.vmem [shape: f32[8,8], index: 11, kind: input, shape index: {}]   ;;  %s2436_s12 = inlined_call_operand.vmem [shape: f32[8,1], index: 12, kind: input, shape index: {}]   ;;  %s2437_s13 = inlined_call_operand.hbm [shape: f32[128,128], index: 13, kind: input, shape index: {}]   ;;  %s2438_s14 = inlined_call_operand.vmem [shape: f32[1,128], index: 14, kind: input, shape index: {}]   ;;  %s2439_s15 = inlined_call_operand.hbm [shape: f32[2,8,128], index: 15, kind: output, shape index: {}]  }
   0x1   :  { %2448 = sst [smem:[#allocation29_spill]] %s2425_s1  ;;  %v20_v0 = vstv %s2432_s8 }
   0x2   :  { %2449 = sst [smem:[#allocation30_spill]] %s2426_s2  ;;  %21 = vst [vmem:[#allocation2] sm:$0x1] %v20_v0 }
   0x3   :  { %22 = vsyncpa [#allocation4], 0 }
   0x4   :  { %23 = vsyncpa [#allocation7], 0 }
   0x5   :  { %24 = vsyncpa [#allocation10], 0 }
   0x6   :  { %25 = vsyncpa [#allocation13], 0 }
   0x7   :  { %26 = vsyncpa [#allocation16], 0 }
   0x8   :  { %27 = vsyncpa [#allocation5], 0 }
   0x9   :  { %29 = vsyncpa [#allocation5 + $0x1], 0  ;;  %s2124_s20 = smov 0   ;;  %s2126_s21 = smov 0  }
   0xa   :  { %s2128_s22 = smov 0   ;;  %s2130_s23 = smov 0  }
   0xb LB: > { %2450 = sst [smem:[#allocation24_spill]] %s2010_s20  ;;  %s2145_s8 = sadd.s32 4294967295, %s2022_s23   ;;  %s2022_s23 = sphi %s2130_s23, %s2477_s23   ;;  %s2018_s22 = sphi %s2128_s22, %s2479_s22   ;;  %s2014_s21 = sphi %s2126_s21, %s2481_s21   ;;  %s2010_s20 = sphi %s2124_s20, %s2480_s20  }
   0xc   : > { %2451 = sst [smem:[#allocation25_spill]] %s2018_s22  ;;  %s1442_s24 = sadd.s32 4294967294, %s2022_s23  }
   0xd   : > { %s2149_s25 = sadd.s32 1, %s2022_s23   ;;  %s362_s26 = sadd.s32 1, %s2018_s22 }
   0xe   : > { %2452 = sst [smem:[#allocation26_spill]] %s2149_s25  ;;  %s359_s27 = ssub.s32 %s2022_s23, %s2149_s25 }
   0xf   : > { %p372_p0 = scmp.ne.s32.totalorder %s2018_s22, %s2014_s21  ;;  %p360_p1 = scmp.eq.s32.totalorder %s359_s27, 0 }
  0x10   : > { %p373_p2 = scmp.eq.s32.totalorder %s2145_s8, 1  ;;  %p378_p3 = scmp.ne.s32.totalorder %s2014_s21, %s2010_s20 }
  0x11   : > { %p379_p4 = scmp.eq.s32.totalorder %s1442_s24, 1  ;;  %p1443_p7 = scmp.ge.s32.totalorder %s2022_s23, 1 }
  0x12   : > { %s2160_s28 = scalar_select %p360_p1, %s2018_s22, %s362_s26  }
  0x13   : > { %p2162_p5 = por %p373_p2, %p372_p0  ;;  %p2166_p6 = por %p379_p4, %p378_p3 }
  0x14   : > { %2453 = sst [smem:[#allocation27_spill]] %s2160_s28  ;;  %p386_p8 = scmp.lt.s32.totalorder %s2022_s23, 3 }
  0x15   : > { %s2454_s29 = scalar_select %p2162_p5, 1, 0 }
  0x16   : > { %s2455_s30 = scalar_select %p2166_p6, 1, 0 }
  0x17   : > { %p2444_p9 = scmp.eq.s32.totalorder %s2145_s8, 0  ;;  %p2173_p10 = pnand %p1443_p7, %p386_p8 }
  0x18   : > { %2456 = sst [smem:[#allocation28_spill]] %s2455_s30  ;;  %s2024_s17 = smov [#allocation6]  }
  0x19   : > { %s2457_s16 = scalar_select %p2173_p10, 1, 0 }
  0x1a   : > { %s410_s18 = sshll.u32 %s2024_s17, 4  ;;  %p1628_p11 = pneg %p2173_p10  ;;  %s411_s18 = int_to_ptr.vmem [resolvable:$true] %s410_s18 }
  0x1b   : > { %s2025_s19 = smov [#allocation9]   ;;  %s2026_s27 = smov [#allocation12]  }
  0x1c   : > { %s434_s24 = sshll.u32 %s2025_s19, 4  ;;  %p2181_p12 = pnand %p2444_p9, %p1628_p11  ;;  %s435_s24 = int_to_ptr.vmem [resolvable:$true] %s434_s24 }
  0x1d   : > { %s456_s28 = sshll.u32 %s2026_s27, 4  ;;  %s1745_s17 = scalar_lea.vmem %s411_s18, 16  ;;  %s2185_s28 = int_to_ptr.vmem [resolvable:$true] %s456_s28 }
  0x1e   : > { %p2189_p13 = pneg %p2181_p12  ;;  %p1746_p0 = scmp.ne.s32.totalorder %s411_s18, %s1745_s17 }
  0x1f   : > { %s1752_s19 = scalar_lea.vmem %s411_s18, 32  ;;  %p1753_p3 = scmp.lt.s32.totalorder %s411_s18, %s411_s18 }
  0x20   : > { %p1748_p1 = pnand %p1746_p0, %p2189_p13  ;;  %p1754_p4 = scmp.lt.s32.totalorder %s1752_s19, %s1745_s17 }
  0x22   : > { %p1749_p2 = pneg %p1748_p1  ;;  %p1755_p7 = por %p1754_p4, %p1753_p3 }
  0x24   : > { %p1756_p8 = pnand %p1755_p7, %p1749_p2 }
  0x26   : > { %1759 = shalt.err (!%p1756_p8)
}
  0x27   : > { %s2460_s2 = sld [smem:[#allocation30_spill]]  ;;  %s1771_s30 = scalar_lea.vmem %s435_s24, 16 }
  0x28   : > { %p1772_p11 = scmp.ne.s32.totalorder %s435_s24, %s1771_s30  ;;  %s1778_s20 = scalar_lea.vmem %s435_s24, 32 }
  0x29   : > { %p1779_p0 = scmp.lt.s32.totalorder %s435_s24, %s435_s24  ;;  %p1780_p1 = scmp.lt.s32.totalorder %s1778_s20, %s1771_s30 }
  0x2a   : > { %p1774_p9 = pnand %p1772_p11, %p2189_p13 }
  0x2b   : > { %p1781_p5 = por %p1780_p1, %p1779_p0 }
  0x2c   : > { %p1775_p6 = pneg %p1774_p9 }
  0x2d   : > { %1634 = dma.hbm_to_vmem [thread:$0]  (!%p2181_p12), %s2460_s2, 16, %s411_s18, [#allocation7]  }
  0x2e   : > { %p1782_p10 = pnand %p1781_p5, %p1775_p6 }
  0x30   : > { %1785 = shalt.err (!%p1782_p10)
}
  0x31   : > { %1640 = dma.hbm_to_vmem [thread:$0]  (!%p2181_p12), %s2428_s4, 16, %s435_s24, [#allocation10]  }
  0x32   : > { %s1797_s25 = scalar_lea.vmem %s2185_s28, 16  ;;  %s1804_s20 = scalar_lea.vmem %s2185_s28, 32 }
  0x33   : > { %p1798_p2 = scmp.ne.s32.totalorder %s2185_s28, %s1797_s25  ;;  %p1805_p5 = scmp.lt.s32.totalorder %s2185_s28, %s2185_s28 }
  0x34   : > { %p1806_p6 = scmp.lt.s32.totalorder %s1804_s20, %s1797_s25 }
  0x35   : > { %p1800_p9 = pnand %p1798_p2, %p2189_p13 }
  0x36   : > { %p1807_p10 = por %p1806_p6, %p1805_p5 }
  0x37   : > { %p1801_p3 = pneg %p1800_p9 }
  0x39   : > { %p1808_p4 = pnand %p1807_p10, %p1801_p3 }
  0x3b   : > { %1811 = shalt.err (!%p1808_p4)
}
  0x3c   : > { %1646 = dma.hbm_to_vmem [thread:$0]  (!%p2181_p12), %s2430_s6, 16, %s2185_s28, [#allocation13]  }
  0x3d   : > { %s2027_s24 = smov [#allocation3]   ;;  %s2028_s17 = smov [#allocation8]  }
  0x3e   : > { %s399_s27 = sshll.u32 %s2027_s24, 4  ;;  %s420_s19 = sshll.u32 %s2028_s17, 4  ;;  %s400_s27 = int_to_ptr.vmem [resolvable:$true] %s399_s27  ;;  %s421_s19 = int_to_ptr.vmem [resolvable:$true] %s420_s19 }
  0x3f   : > { %s1823_s2 = scalar_lea.vmem %s400_s27, 16  ;;  %s1830_s25 = scalar_lea.vmem %s400_s27, 32 }
  0x40   : > { %p1824_p7 = scmp.ne.s32.totalorder %s400_s27, %s1823_s2  ;;  %p1831_p0 = scmp.lt.s32.totalorder %s400_s27, %s400_s27 }
  0x41   : > { %p1832_p1 = scmp.lt.s32.totalorder %s1830_s25, %s1823_s2 }
  0x42   : > { %p1826_p8 = pnand %p1824_p7, %p2189_p13 }
  0x43   : > { %p1833_p2 = por %p1832_p1, %p1831_p0 }
  0x44   : > { %p1827_p11 = pneg %p1826_p8 }
  0x46   : > { %p1834_p9 = pnand %p1833_p2, %p1827_p11 }
  0x48   : > { %1837 = shalt.err (!%p1834_p9)
}
  0x49   : > { %s2461_s1 = sld [smem:[#allocation29_spill]]  ;;  %s1849_s30 = scalar_lea.vmem %s421_s19, 2048 }
  0x4a   : > { %p1850_p3 = scmp.ne.s32.totalorder %s421_s19, %s1849_s30  ;;  %p1857_p10 = scmp.lt.s32.totalorder %s421_s19, %s421_s19 }
  0x4b   : > { %p1858_p4 = scmp.lt.s32.totalorder %s1849_s30, %s1849_s30 }
  0x4c   : > { %p1852_p5 = pnand %p1850_p3, %p2189_p13 }
  0x4d   : > { %p1859_p7 = por %p1858_p4, %p1857_p10 }
  0x4e   : > { %p1853_p6 = pneg %p1852_p5 }
  0x4f   : > { %1631 = dma.hbm_to_vmem [thread:$0]  (!%p2181_p12), %s2461_s1, 16, %s400_s27, [#allocation4]  }
  0x50   : > { %p1860_p8 = pnand %p1859_p7, %p1853_p6 }
  0x52   : > { %1863 = shalt.err (!%p1860_p8)
}
  0x53   : > { %s2029_s2 = smov 128   ;;  %s2030_s18 = smov 8  }
  0x54   : > { %1637 = dma.hbm_to_vmem [thread:$0]  (!%p2181_p12), %s2427_s3, 2048, %s421_s19, [#allocation7], %s2029_s2, %s2029_s2, %s2030_s18  }
  0x55   : > { %s2031_s17 = smov [#allocation11]   ;;  %s2032_s20 = smov [#allocation14]  }
  0x56   : > { %s445_s25 = sshll.u32 %s2031_s17, 4  ;;  %s467_s28 = sshll.u32 %s2032_s20, 4  ;;  %s446_s25 = int_to_ptr.vmem [resolvable:$true] %s445_s25  ;;  %s468_s28 = int_to_ptr.vmem [resolvable:$true] %s467_s28 }
  0x57   : > { %s1875_s30 = scalar_lea.vmem %s446_s25, 16  ;;  %s1882_s1 = scalar_lea.vmem %s446_s25, 32 }
  0x58   : > { %p1876_p11 = scmp.ne.s32.totalorder %s446_s25, %s1875_s30  ;;  %p1883_p2 = scmp.lt.s32.totalorder %s446_s25, %s446_s25 }
  0x59   : > { %p1884_p9 = scmp.lt.s32.totalorder %s1882_s1, %s1875_s30 }
  0x5a   : > { %p1878_p0 = pnand %p1876_p11, %p2189_p13 }
  0x5b   : > { %p1885_p3 = por %p1884_p9, %p1883_p2 }
  0x5c   : > { %p1879_p1 = pneg %p1878_p0 }
  0x5e   : > { %p1886_p5 = pnand %p1885_p3, %p1879_p1 }
  0x60   : > { %1889 = shalt.err (!%p1886_p5)
}
  0x61   : > { %1643 = dma.hbm_to_vmem [thread:$0]  (!%p2181_p12), %s2429_s5, 16, %s446_s25, [#allocation10]  }
  0x62   : > { %s1901_s27 = scalar_lea.vmem %s468_s28, 16  ;;  %s1908_s17 = scalar_lea.vmem %s468_s28, 32 }
  0x63   : > { %p1902_p6 = scmp.ne.s32.totalorder %s468_s28, %s1901_s27  ;;  %p1909_p7 = scmp.lt.s32.totalorder %s468_s28, %s468_s28 }
  0x64   : > { %p1910_p8 = scmp.lt.s32.totalorder %s1908_s17, %s1901_s27 }
  0x65   : > { %p1904_p10 = pnand %p1902_p6, %p2189_p13 }
  0x66   : > { %p1911_p11 = por %p1910_p8, %p1909_p7 }
  0x67   : > { %p1905_p4 = pneg %p1904_p10 }
  0x69   : > { %p1912_p0 = pnand %p1911_p11, %p1905_p4 }
  0x6b   : > { %1915 = shalt.err (!%p1912_p0)
}
  0x6c   : > { %1649 = dma.hbm_to_vmem [thread:$0]  (!%p2181_p12), %s2431_s7, 16, %s468_s28, [#allocation13]  }
  0x6d   : > { %s2033_s25 = smov [#allocation15]  }
  0x6e   : > { %s492_s30 = sshll.u32 %s2033_s25, 4  ;;  %s493_s30 = int_to_ptr.vmem [resolvable:$true] %s492_s30 }
  0x6f   : > { %s1927_s24 = scalar_lea.vmem %s493_s30, 2048  ;;  %p1935_p3 = scmp.lt.s32.totalorder %s493_s30, %s493_s30 }
  0x70   : > { %p1928_p1 = scmp.ne.s32.totalorder %s493_s30, %s1927_s24  ;;  %p1936_p5 = scmp.lt.s32.totalorder %s1927_s24, %s1927_s24 }
  0x72   : > { %p1930_p2 = pnand %p1928_p1, %p2189_p13  ;;  %p1937_p6 = por %p1936_p5, %p1935_p3 }
  0x74   : > { %p1931_p9 = pneg %p1930_p2 }
  0x76   : > { %p1938_p10 = pnand %p1937_p6, %p1931_p9 }
  0x78   : > { %1941 = shalt.err (!%p1938_p10)
}
  0x79   : > { %1652 = dma.hbm_to_vmem [thread:$0]  (!%p2181_p12), %s2437_s13, 2048, %s493_s30, [#allocation16], %s2029_s2, %s2029_s2, %s2030_s18  }
  0x7a   : > { %p2462_p4 = scmp.ne.s32.totalorder %s2457_s16, 0 }
  0x7b   : > { %p2463_p13 = scmp.eq.s32.totalorder (!%p2462_p4), %s2145_s8, 0 }
  0x7c   : > { %518 = sbr.rel (%p2462_p4) target bundleno = 1509 (0x5e5), region = 80 }
  0x81   : > { %1985 = dma.done.wait (%p2463_p13), [#allocation4], 16   ;;  %p2464_p7 = pmov %p2463_p13 }
  0x83   : > { %1987 = vsyncadd (%p2464_p7), [#allocation4], 4294967280  ;;  %p2465_p8 = pmov %p2464_p7 }
  0x84   : > { %p2466_p11 = pmov %p2464_p7 }
  0x85   : > { %1989 = dma.done.wait (%p2465_p8), [#allocation7], 2064  }
  0x86   : > { %1991 = vsyncadd (%p2466_p11), [#allocation7], 4294965232  ;;  %p2467_p0 = pmov %p2464_p7 }
  0x88   : > { %1993 = dma.done.wait (%p2467_p0), [#allocation10], 32   ;;  %p2468_p12 = pmov %p2467_p0 }
  0x89   : > { %p2469_p1 = pmov %p2467_p0 }
  0x8a   : > { %1995 = vsyncadd (%p2468_p12), [#allocation10], 4294967264 }
  0x8b   : > { %1997 = dma.done.wait (%p2469_p1), [#allocation13], 32   ;;  %p2470_p2 = pmov %p2467_p0 }
  0x8c   : > { %p2471_p9 = pmov %p2467_p0 }
  0x8d   : > { %1999 = vsyncadd (%p2470_p2), [#allocation13], 4294967264 }
  0x8e   : > { %2001 = dma.done.wait (%p2471_p9), [#allocation16], 2048   ;;  %p2472_p3 = pmov %p2467_p0 }
  0x8f   : > { %p593_p5 = scmp.lt.s32.totalorder %s2145_s8, 1  ;;  %v645_v2 = vld [vmem:[#allocation8 + $0x78] sm:$0xff]  ;;  %v2034_v3 = vmov 0.0   ;;  %v644_v4 = vld [vmem:[#allocation8 + $0x70] sm:$0xff]  ;;  %v643_v5 = vld [vmem:[#allocation8 + $0x68] sm:$0xff]  ;;  %v605_v7 = vlaneseq  ;;  %vm2035_vm1 = vmmov 0  }
  0x90   : > { %2003 = vsyncadd (%p2472_p3), [#allocation16], 4294965248  ;;  %1514 = vmatprep.subr.mxu0 %v2034_v3  ;;  %1554 = vmatprep.subr.mxu1 %v2034_v3  ;;  %v642_v6 = vld [vmem:[#allocation8 + $0x60] sm:$0xff]  ;;  %v641_v14 = vld [vmem:[#allocation8 + $0x58] sm:$0xff]  ;;  %v2036_v52 = vmov 1983009808  }
  0x91   : > { %s594_s22 = scalar_select %p593_p5, %s2145_s8, 1  ;;  %1515 = vmatpush3.msra.mxu0 %v645_v2  ;;  %v2298_v9 = vand.u32 127, %v605_v7  ;;  %v640_v15 = vld [vmem:[#allocation8 + $0x50] sm:$0xff]  ;;  %v639_v16 = vld [vmem:[#allocation8 + $0x48] sm:$0xff]  ;;  %v638_v17 = vld [vmem:[#allocation8 + $0x40] sm:$0xff]  ;;  %1546 = vmatprep.mubr.msk.f32.mxu0 %vm2035_vm1, %v2034_v3  ;;  %v771_v53 = vunpack.c.l.s4 %v2036_v52  ;;  %v2326_v57 = vshrl.u32 %v605_v7, 7 }
  0x92   : > { %1516 = vmatprep.subr.mxu0 %v2034_v3  ;;  %v637_v18 = vld [vmem:[#allocation8 + $0x38] sm:$0xff]  ;;  %1556 = vmatprep.mubr.msk.f32.mxu1 %vm2035_vm1, %v2034_v3  ;;  %v636_v19 = vld [vmem:[#allocation8 + $0x30] sm:$0xff]  ;;  %v635_v20 = vld [vmem:[#allocation8 + $0x28] sm:$0xff]  ;;  %v2037_v54 = vmov 1934713408   ;;  %vm761_vm3 = vcmask 1040384  }
  0x93   : > { %s1463_s16 = sshll.u32 %s594_s22, 3  ;;  %1517 = vmatpush3.msra.mxu0 %v644_v4  ;;  %vm607_vm0 = vcmp.lt.s32.totalorder %v2298_v9, 32  ;;  %v634_v21 = vld [vmem:[#allocation8 + $0x20] sm:$0xff]  ;;  %v633_v22 = vld [vmem:[#allocation8 + $0x18] sm:$0xff]  ;;  %v632_v23 = vld [vmem:[#allocation8 + $0x10] sm:$0xff]  ;;  %vm736_vm2 = vcmp.lt.s32.totalorder %v2298_v9, 64  ;;  %v786_v55 = vunpack.c.l.s4 %v2037_v54  ;;  %v772_v56 = vunpack.c.0.s8 %v771_v53 }
  0x94   : > { %s596_s18 = scalar_lea.vmem %s2424_s0, %s1463_s16  ;;  %1518 = vmatprep.subr.mxu0 %v2034_v3  ;;  %v631_v24 = vld [vmem:[#allocation8 + $0x8] sm:$0xff]  ;;  %v630_v25 = vld [vmem:[#allocation8] sm:$0xff]  ;;  %v1464_v30 = vld [vmem:[#allocation3] ss:$0 sm:$0xff]  ;;  %vm828_vm4 = vcmask 1041409   ;;  %vm831_vm5 = vcmask 1042434  }
  0x95   : > { %v2288_v1 = vld [vmem:[%s596_s18] sm:$0xff]  ;;  %1519 = vmatpush3.msra.mxu0 %v643_v5  ;;  %v787_v60 = vunpack.c.0.s8 %v786_v55  ;;  %v1468_v62 = vld [vmem:[#allocation12] ss:$0 sm:$0xff]  ;;  %v2329_v63 = vsub.s32 %v772_v56, %v2326_v57  ;;  %v759_v2 = vld [vmem:[#allocation14] sm:$0x1]  ;;  %vm834_vm6 = vcmask 1043459  }
  0x96   : > { %600 = vadd.xlane.f32.xlu0 %v2288_v1  ;;  %1520 = vmatprep.subr.mxu0 %v2034_v3  ;;  %v1465_v32 = vld [vmem:[#allocation6] ss:$0 sm:$0xff]  ;;  %v1466_v35 = vld [vmem:[#allocation9] ss:$0 sm:$0xff]  ;;  %v1467_v59 = vld [vmem:[#allocation11] ss:$0 sm:$0xff] }
  0x97   : > { %1521 = vmatpush3.msra.mxu0 %v642_v6  ;;  %v2332_v4 = vsub.s32 %v787_v60, %v2326_v57  ;;  %vm837_vm7 = vcmask 1044484   ;;  %vm840_vm8 = vcmask 1045509   ;;  %vm843_vm9 = vcmask 1046534   ;;  %v1207_v52 = vld [vmem:[#allocation15 + $0x60] sm:$0xff]  ;;  %v1206_v53 = vld [vmem:[#allocation15 + $0x58] sm:$0xff]  ;;  %v1205_v54 = vld [vmem:[#allocation15 + $0x50] sm:$0xff] }
  0x98   : > { %1522 = vmatprep.subr.mxu0 %v2034_v3  ;;  %vm846_vm10 = vcmask 1047559   ;;  %vm849_vm11 = vcmask 64512   ;;  %v1204_v55 = vld [vmem:[#allocation15 + $0x48] sm:$0xff]  ;;  %v1203_v56 = vld [vmem:[#allocation15 + $0x40] sm:$0xff]  ;;  %s590_s28 = sand.u32 1, %s2014_s21   ;;  %s1473_s2 = sshll.u32 %s2145_s8, 7 }
  0x99   : > { %1523 = vmatpush3.msra.mxu0 %v641_v14  ;;  %v1200_v60 = vld [vmem:[#allocation15 + $0x28] sm:$0xff]  ;;  %s1462_s22 = sshll.u32 %s590_s28, 3  ;;  %s1302_s20 = scalar_lea.hbm %s2439_s15, %s1473_s2 }
  0x9a   : > { %1524 = vmatprep.subr.mxu0 %v2034_v3  ;;  %s592_s18 = scalar_lea.vmem [#allocation17], %s1462_s22  ;;  %s1291_s25 = scalar_lea.sflag [#allocation5], %s590_s28 }
  0x9b   : > { %1525 = vmatpush3.msra.mxu0 %v640_v15  ;;  %s1304_s27 = sshll.u32 %s592_s18, 4  ;;  %p2473_p10 = scmp.ne.s32.totalorder %s2454_s29, 0  ;;  %s1305_s27 = int_to_ptr.vmem [resolvable:$true] %s1304_s27 }
  0x9c   : > { %1526 = vmatprep.subr.mxu0 %v2034_v3  ;;  %s1942_s30 = scalar_lea.vmem %s1305_s27, 128  ;;  %s2040_s24 = smov [#allocation17]  }
  0x9d   : > { %1527 = vmatpush3.msra.mxu0 %v639_v16  ;;  %p1943_p6 = scmp.ne.s32.totalorder %s1305_s27, %s1942_s30  ;;  %s1946_s8 = sshll.u32 %s2040_s24, 4  ;;  %s1947_s8 = int_to_ptr.vmem [resolvable:$false] %s1946_s8 }
  0x9e   : > { %1528 = vmatprep.subr.mxu0 %v2034_v3  ;;  %s1948_s19 = scalar_lea.vmem %s1947_s8, 256  ;;  %p1949_p7 = scmp.lt.s32.totalorder %s1305_s27, %s1947_s8 }
  0x9f   : > { %1529 = vmatpush3.msra.mxu0 %v638_v17  ;;  %p1944_p4 = pnand %p1943_p6, %p2473_p10  ;;  %p1950_p8 = scmp.lt.s32.totalorder %s1948_s19, %s1942_s30 }
  0xa0   : > { %1530 = vmatprep.subr.mxu0 %v2034_v3 }
  0xa1   : > { %1531 = vmatpush3.msra.mxu0 %v637_v18  ;;  %p1945_p13 = pneg %p1944_p4  ;;  %p1951_p11 = por %p1950_p8, %p1949_p7 }
  0xa2   : > { %1532 = vmatprep.subr.mxu0 %v2034_v3 }
  0xa3   : > { %1533 = vmatpush3.msra.mxu0 %v636_v19  ;;  %p1952_p0 = pnand %p1951_p11, %p1945_p13 }
  0xa4   : > { %1534 = vmatprep.subr.mxu0 %v2034_v3 }
  0xa5   : > { %1535 = vmatpush3.msra.mxu0 %v635_v20 }
  0xa6   : > { %1536 = vmatprep.subr.mxu0 %v2034_v3 }
  0xa7   : > { %1537 = vmatpush3.msra.mxu0 %v634_v21 }
  0xa8   : > { %1538 = vmatprep.subr.mxu0 %v2034_v3 }
  0xa9   : > { %1539 = vmatpush3.msra.mxu0 %v633_v22 }
  0xaa   : > { %1540 = vmatprep.subr.mxu0 %v2034_v3 }
  0xab   : > { %1541 = vmatpush3.msra.mxu0 %v632_v23 }
  0xac   : > { %1542 = vmatprep.subr.mxu0 %v2034_v3 }
  0xad   : > { %1543 = vmatpush3.msra.mxu0 %v631_v24 }
  0xae   : > { %1544 = vmatprep.subr.mxu0 %v2034_v3 }
  0xaf   : > { %1545 = vmatpush3.msra.mxu0 %v630_v25 }
  0xb0   : > { %1549 = vmatprep.subr.mxu0 %v2034_v3 }
 0x11f   : > { %v601_v8 = vpop.xlane.xlu0 %600 }
 0x120   : > { %v603_v10 = vmul.f32 0.03125, %v601_v8 }
 0x122   : > { %v604_v11 = vsub.f32 %v2288_v1, %v603_v10 }
 0x124   : > { %v608_v12 = vmul.f32 %v604_v11, %v604_v11 }
 0x126   : > { %v609_v13 = vsel %vm607_vm0, %v608_v12, 0.0 }
 0x127   : > { %610 = vadd.xlane.f32.xlu0 %v609_v13 }
 0x1b0   : > { %v611_v26 = vpop.xlane.xlu0 %610 }
 0x1b1   : > { %v612_v27 = vmul.f32 0.03125, %v611_v26 }
 0x1b3   : > { %v613_v28 = vadd.f32 1e-05, %v612_v27 }
 0x1b5   : > { %1724 = vrsqrt.f32 %v613_v28 }
 0x1c2   : > { %v1725_v29 = vpop.eup %1724 }
 0x1c3   : > { %v615_v31 = vmul.f32 %v1725_v29, %v604_v11 }
 0x1c5   : > { %v622_v33 = vmul.f32 %v1464_v30, %v615_v31 }
 0x1c7   : > { %v629_v34 = vadd.f32 %v1465_v32, %v622_v33 }
 0x1c9   : > { %1547 = vmatmul.mubr.f32.vlgmr.msra.gmra.mxu0 %v629_v34  ;;  %v818_v34 = vld [vmem:[%s2433_s9] sm:$0xff] }
 0x1ca   : > { %1551 = vmatprep.mubr.msk.f32.mxu0 %vm2035_vm1, %v2034_v3 }
 0x289   : > { %v719_v36 = vpop.f32.mrf.mxu0 }
 0x28a   : > { %v720_v37 = vadd.f32 %v1466_v35, %v719_v36  ;;  %v981_v35 = vld [vmem:[%s2435_s11] sm:$0xff] }
 0x28b   : > { %v1548_v38 = vpop.f32.mrf.mxu0 }
 0x28c   : > { %v725_v39 = vmul.f32 0.70710677, %v720_v37  ;;  %v723_v41 = vmul.f32 0.5, %v720_v37  ;;  %v2038_v37 = vmov 0   ;;  %v765_v38 = vld [vmem:[#allocation2] sm:$0x1] }
 0x28d   : > { %1722 = vset.pattern.permute.xlu1 %v2038_v37  ;;  %1723 = vset.pattern.permute.xlu0 %v2038_v37 }
 0x28e   : > { %1726 = verf.f32 %v725_v39 }
 0x29b   : > { %v1727_v40 = vpop.eup %1726 }
 0x29c   : > { %v727_v42 = vadd.f32 1.0, %v1727_v40 }
 0x29e   : > { %v2320_v43 = vmul.f32 %v727_v42, %v723_v41  ;;  %v1130_v41 = vsub.s32 0, %v2326_v57 }
 0x2a0   : > { %731 = vadd.xlane.f32.xlu1 %v2320_v43 }
 0x329   : > { %v732_v44 = vpop.xlane.xlu1 %731 }
 0x32a   : > { %v734_v45 = vmul.f32 0.015625, %v732_v44 }
 0x32c   : > { %v735_v46 = vsub.f32 %v2320_v43, %v734_v45 }
 0x32e   : > { %v737_v47 = vmul.f32 %v735_v46, %v735_v46 }
 0x330   : > { %v738_v48 = vsel %vm736_vm2, %v737_v47, 0.0  ;;  %v1127_v47 = vld [vmem:[%s2434_s10] sm:$0xff] }
 0x331   : > { %739 = vadd.xlane.f32.xlu1 %v738_v48  ;;  %v1210_v48 = vld [vmem:[#allocation15 + $0x78] sm:$0xff] }
 0x3ba   : > { %v740_v49 = vpop.xlane.xlu1 %739 }
 0x3bb   : > { %v741_v50 = vmul.f32 0.015625, %v740_v49 }
 0x3bd   : > { %v742_v51 = vadd.f32 1e-05, %v741_v50  ;;  %v1209_v50 = vld [vmem:[#allocation15 + $0x70] sm:$0xff] }
 0x3bf   : > { %1728 = vrsqrt.f32 %v742_v51  ;;  %v1208_v51 = vld [vmem:[#allocation15 + $0x68] sm:$0xff] }
 0x3cc   : > { %v1729_v58 = vpop.eup %1728 }
 0x3cd   : > { %v744_v61 = vmul.f32 %v1729_v58, %v735_v46  ;;  %v1126_v46 = vld [vmem:[%s2436_s12] sm:$0xff] }
 0x3ce   : > { %v1202_v58 = vld [vmem:[#allocation15 + $0x38] sm:$0xff] }
 0x3cf   : > { %v751_v0 = vmul.f32 %v1467_v59, %v744_v61  ;;  %v1201_v59 = vld [vmem:[#allocation15 + $0x30] sm:$0xff]  ;;  %v1199_v61 = vld [vmem:[#allocation15 + $0x20] sm:$0xff] }
 0x3d1   : > { %v758_v5 = vadd.f32 %v1468_v62, %v751_v0  ;;  %v1198_v62 = vld [vmem:[#allocation15 + $0x18] sm:$0xff]  ;;  %v1197_v0 = vld [vmem:[#allocation15 + $0x10] sm:$0xff] }
 0x3d3   : > { %v760_v6 = vmul.f32 %v759_v2, %v758_v5  ;;  %v769_v8 = vcombine.high %v758_v5, %v2034_v3  ;;  %v776_v7 = vrot.slane %v758_v5, %v2329_v63  ;;  %v1196_v2 = vld [vmem:[#allocation15 + $0x8] sm:$0xff]  ;;  %v1195_v5 = vld [vmem:[#allocation15] sm:$0xff] }
 0x3d5   : > { %v762_v9 = vsel %vm761_vm3, %v760_v6, 0.0  ;;  %v783_v10 = vrot.slane %v769_v8, %v2329_v63  ;;  %v784_v11 = vcombine.high %v776_v7, %v2034_v3  ;;  %v791_v12 = vrot.slane %v776_v7, %v2332_v4 }
 0x3d6   : > { %763 = vadd.xlane.f32.xlu0 %v762_v9 }
 0x3d7   : > { %v798_v13 = vrot.slane %v784_v11, %v2332_v4  ;;  %v814_v14 = vcombine.high %v791_v12, %v2034_v3  ;;  %v799_v15 = vcombine.high %v783_v10, %v2034_v3  ;;  %v806_v16 = vrot.slane %v783_v10, %v2332_v4 }
 0x3d8   : > { %v2039_v10 = vmov 1966171168  }
 0x3d9   : > { %v827_v17 = vrot.slane %v814_v14, 7  ;;  %v830_v18 = vrot.slane %v798_v13, 6  ;;  %v813_v19 = vrot.slane %v799_v15, %v2332_v4  ;;  %v815_v20 = vcombine.high %v798_v13, %v2034_v3 }
 0x3da   : > { %v816_v21 = vcombine.high %v806_v16, %v2034_v3  ;;  %v836_v26 = vrot.slane %v806_v16, 4  ;;  %v926_v11 = vunpack.c.l.s4 %v2039_v10 }
 0x3db   : > { %v817_v22 = vcombine.high %v813_v19, %v2034_v3  ;;  %v829_v23 = vsel %vm828_vm4, %v827_v17, %v791_v12  ;;  %v833_v24 = vrot.slane %v815_v20, 5  ;;  %v842_v30 = vrot.slane %v813_v19, 2 }
 0x3dc   : > { %v832_v25 = vsel %vm831_vm5, %v830_v18, %v829_v23  ;;  %v839_v28 = vrot.slane %v816_v21, 3  ;;  %v927_v12 = vunpack.c.0.s8 %v926_v11 }
 0x3dd   : > { %v835_v27 = vsel %vm834_vm6, %v833_v24, %v832_v25  ;;  %v845_v32 = vrot.slane %v817_v22, 1 }
 0x3de   : > { %v838_v29 = vsel %vm837_vm7, %v836_v26, %v835_v27  ;;  %v930_v15 = vsub.s32 %v927_v12, %v2326_v57 }
 0x3df   : > { %v841_v31 = vsel %vm840_vm8, %v839_v28, %v838_v29 }
 0x3e0   : > { %v844_v33 = vsel %vm843_vm9, %v842_v30, %v841_v31 }
 0x3e1   : > { %v847_v36 = vsel %vm846_vm10, %v845_v32, %v844_v33 }
 0x3e2   : > { %1550 = vmatpush3.msra.mxu0 %v847_v36  ;;  %1555 = vmatpush3.msra.mxu1 %v847_v36 }
 0x3e3   : > { %1552 = vmatmul.mubr.msk.f32.vlgmr.msra.gmra.mxu0 %vm849_vm11, %v818_v34  ;;  %1557 = vmatmul.mubr.msk.f32.vlgmr.msra.gmra.mxu1 %vm849_vm11, %v981_v35 }
 0x3e4   : > { %1559 = vmatprep.subr.mxu1 %v2034_v3  ;;  %1591 = vmatprep.mubr.msk.f32.mxu1 %vm2035_vm1, %v2034_v3 }
 0x3e5   : > { %1560 = vmatpush3.msra.mxu1 %v1210_v48 }
 0x3e6   : > { %1561 = vmatprep.subr.mxu1 %v2034_v3 }
 0x3e7   : > { %1562 = vmatpush3.msra.mxu1 %v1209_v50 }
 0x3e8   : > { %1563 = vmatprep.subr.mxu1 %v2034_v3 }
 0x3e9   : > { %1564 = vmatpush3.msra.mxu1 %v1208_v51 }
 0x3ea   : > { %1565 = vmatprep.subr.mxu1 %v2034_v3 }
 0x3eb   : > { %1566 = vmatpush3.msra.mxu1 %v1207_v52 }
 0x3ec   : > { %1567 = vmatprep.subr.mxu1 %v2034_v3 }
 0x3ed   : > { %1568 = vmatpush3.msra.mxu1 %v1206_v53 }
 0x3ee   : > { %1569 = vmatprep.subr.mxu1 %v2034_v3 }
 0x3ef   : > { %1570 = vmatpush3.msra.mxu1 %v1205_v54 }
 0x3f0   : > { %1571 = vmatprep.subr.mxu1 %v2034_v3 }
 0x3f1   : > { %1572 = vmatpush3.msra.mxu1 %v1204_v55 }
 0x3f2   : > { %1573 = vmatprep.subr.mxu1 %v2034_v3 }
 0x3f3   : > { %1574 = vmatpush3.msra.mxu1 %v1203_v56 }
 0x3f4   : > { %1575 = vmatprep.subr.mxu1 %v2034_v3 }
 0x3f5   : > { %1576 = vmatpush3.msra.mxu1 %v1202_v58 }
 0x3f6   : > { %1577 = vmatprep.subr.mxu1 %v2034_v3 }
 0x3f7   : > { %1578 = vmatpush3.msra.mxu1 %v1201_v59 }
 0x3f8   : > { %1579 = vmatprep.subr.mxu1 %v2034_v3 }
 0x3f9   : > { %1580 = vmatpush3.msra.mxu1 %v1200_v60 }
 0x3fa   : > { %1581 = vmatprep.subr.mxu1 %v2034_v3 }
 0x3fb   : > { %1582 = vmatpush3.msra.mxu1 %v1199_v61 }
 0x3fc   : > { %1583 = vmatprep.subr.mxu1 %v2034_v3 }
 0x3fd   : > { %1584 = vmatpush3.msra.mxu1 %v1198_v62 }
 0x3fe   : > { %1585 = vmatprep.subr.mxu1 %v2034_v3 }
 0x3ff   : > { %1586 = vmatpush3.msra.mxu1 %v1197_v0 }
 0x400   : > { %1587 = vmatprep.subr.mxu1 %v2034_v3 }
 0x401   : > { %1588 = vmatpush3.msra.mxu1 %v1196_v2 }
 0x402   : > { %1589 = vmatprep.subr.mxu1 %v2034_v3 }
 0x403   : > { %1590 = vmatpush3.msra.mxu1 %v1195_v5 }
 0x45f   : > { %v764_v39 = vpop.xlane.xlu0 %763 }
 0x460   : > { %v766_v40 = vadd.f32 %v765_v38, %v764_v39 }
 0x462   : > { %1730 = vtanh.f32 %v766_v40 }
 0x46f   : > { %v1731_v42 = vpop.eup %1730 }
 0x470   : > { %vm768_vm12 = vcmp.ge.f32.partialorder %v1731_v42, 0.0 }
 0x471   : > { %v1113_v44 = vsel %vm768_vm12, 1, %v2038_v37 }
 0x472   : > { %1115 = vperm.xlu1 %1722, %v1113_v44   ;;  %v1131_v45 = vrot.slane %v1113_v44, %v1130_v41 }
 0x474   : > { %vm1132_vm13 = vcmp.eq.s32.totalorder %v1131_v45, 1 }
 0x475   : > { %v1133_v49 = vsel %vm1132_vm13, %v1126_v46, %v1127_v47 }
 0x476   : > { %1185 = vperm.xlu0 %1723, %v1133_v49  }
 0x4a3   : > { %v919_v6 = vpop.f32.mrf.mxu0  ;;  %v1051_v8 = vpop.f32.mrf.mxu1 }
 0x4a4   : > { %v924_v13 = vcombine.high %v919_v6, %v919_v6  ;;  %v1056_v14 = vcombine.high %v1051_v8, %v1051_v8  ;;  %v931_v18 = vrot.slane %v919_v6, %v930_v15  ;;  %v1063_v19 = vrot.slane %v1051_v8, %v930_v15 }
 0x4a5   : > { %v1553_v7 = vpop.f32.mrf.mxu0  ;;  %v1558_v9 = vpop.f32.mrf.mxu1 }
 0x4a6   : > { %v938_v16 = vrot.slane %v924_v13, %v930_v15  ;;  %v1070_v17 = vrot.slane %v1056_v14, %v930_v15  ;;  %v939_v3 = vcombine.high %v931_v18, %v931_v18  ;;  %v1071_v22 = vcombine.high %v1063_v19, %v1063_v19 }
 0x4a7   : > { %v947_v25 = vrot.slane %v931_v18, %v930_v15  ;;  %v1079_v27 = vrot.slane %v1063_v19, %v930_v15 }
 0x4a8   : > { %v940_v20 = vcombine.high %v938_v16, %v938_v16  ;;  %v1072_v21 = vcombine.high %v1070_v17, %v1070_v17  ;;  %v961_v26 = vrot.slane %v939_v3, %v930_v15  ;;  %v1093_v28 = vrot.slane %v1071_v22, %v930_v15 }
 0x4a9   : > { %v954_v29 = vrot.slane %v938_v16, %v930_v15  ;;  %v1086_v30 = vrot.slane %v1070_v17, %v930_v15  ;;  %v969_v33 = vcombine.high %v947_v25, %v947_v25  ;;  %v1101_v34 = vcombine.high %v1079_v27, %v1079_v27 }
 0x4aa   : > { %v968_v23 = vrot.slane %v940_v20, %v930_v15  ;;  %v1100_v24 = vrot.slane %v1072_v21, %v930_v15  ;;  %v971_v57 = vcombine.high %v961_v26, %v961_v26  ;;  %v1103_v35 = vcombine.high %v1093_v28, %v1093_v28 }
 0x4ab   : > { %v970_v37 = vcombine.high %v954_v29, %v954_v29  ;;  %v1102_v38 = vcombine.high %v1086_v30, %v1086_v30 }
 0x4ac   : > { %v972_v31 = vcombine.high %v968_v23, %v968_v23  ;;  %v1104_v32 = vcombine.high %v1100_v24, %v1100_v24 }
 0x4ed   : > { %v1116_v36 = vpop.permute.xlu1 %1115 }
 0x4ee   : > { %vm1117_vm14 = vcmp.eq.s32.totalorder %v1116_v36, 1 }
 0x4ef   : > { %v1118_v39 = vsel %vm1117_vm14, %v1079_v27, %v947_v25  ;;  %v1119_v40 = vsel %vm1117_vm14, %v1093_v28, %v961_v26  ;;  %v1120_v41 = vsel %vm1117_vm14, %v1101_v34, %v969_v33  ;;  %v1121_v42 = vsel %vm1117_vm14, %v1103_v35, %v971_v57 }
 0x4f0   : > { %v1122_v44 = vsel %vm1117_vm14, %v1086_v30, %v954_v29  ;;  %v1123_v45 = vsel %vm1117_vm14, %v1100_v24, %v968_v23  ;;  %v1124_v46 = vsel %vm1117_vm14, %v1102_v38, %v970_v37  ;;  %v1125_v47 = vsel %vm1117_vm14, %v1104_v32, %v972_v31 }
 0x4f1   : > { %v1134_v48 = vcombine.low %v1118_v39, %v1120_v41  ;;  %v1142_v49 = vcombine.low %v1119_v40, %v1121_v42  ;;  %v1150_v50 = vcombine.low %v1122_v44, %v1124_v46  ;;  %v1158_v51 = vcombine.low %v1123_v45, %v1125_v47  ;;  %v1186_v62 = vpop.permute.xlu0 %1185 }
 0x4f3   : > { %v1141_v52 = vrot.slane %v1134_v48, %v2329_v63  ;;  %v1149_v53 = vrot.slane %v1142_v49, %v2329_v63  ;;  %v1157_v54 = vrot.slane %v1150_v50, %v2329_v63  ;;  %v1165_v55 = vrot.slane %v1158_v51, %v2329_v63  ;;  %v1471_v63 = vld [vmem:[%s2438_s14] ss:$0 sm:$0xff] }
 0x4f5   : > { %v1166_v56 = vcombine.low %v1141_v52, %v1149_v53  ;;  %v1174_v58 = vcombine.low %v1157_v54, %v1165_v55 }
 0x4f7   : > { %v1173_v59 = vrot.slane %v1166_v56, %v2332_v4  ;;  %v1181_v60 = vrot.slane %v1174_v58, %v2332_v4 }
 0x4f9   : > { %v1182_v61 = vcombine.low %v1173_v59, %v1181_v60 }
 0x4fb   : > { %v1188_v0 = vadd.f32 %v1186_v62, %v1182_v61 }
 0x4fd   : > { %v1189_v2 = vadd.f32 %v1188_v0, %v2320_v43 }
 0x4ff   : > { %v1191_v5 = vmul.f32 0.70710677, %v1189_v2  ;;  %v1190_v8 = vmul.f32 0.5, %v1189_v2 }
 0x501   : > { %1732 = verf.f32 %v1191_v5 }
 0x50e   : > { %v1733_v6 = vpop.eup %1732 }
 0x50f   : > { %v1193_v7 = vadd.f32 1.0, %v1733_v6 }
 0x511   : > { %v1194_v9 = vmul.f32 %v1193_v7, %v1190_v8 }
 0x513   : > { %1592 = vmatmul.mubr.f32.vlgmr.msra.gmra.mxu1 %v1194_v9 }
 0x5d3   : > { %v1284_v4 = vpop.f32.mrf.mxu1 }
 0x5d4   : > { %v1285_v10 = vadd.f32 %v1471_v63, %v1284_v4 }
 0x5d5   : > { %v1593_v43 = vpop.f32.mrf.mxu1 }
 0x5d6   : > { %v1288_v11 = vadd.f32 %v1285_v10, %v2288_v1 }
 0x5d8   : > { %1289 = vst [vmem:[%s592_s18] sm:$0xff] %v1288_v11 }
 0x5d9   : > { %1955 = shalt.err (!%p1952_p0)
}
 0x5da   : > { %s1956_s22 = scalar_lea.hbm %s1302_s20, 128  ;;  %s1960_s26 = scalar_lea.hbm %s2439_s15, 256 }
 0x5db   : > { %p1957_p12 = scmp.ne.s32.totalorder %s1302_s20, %s1956_s22  ;;  %p1961_p9 = scmp.lt.s32.totalorder %s1302_s20, %s2439_s15 }
 0x5dc   : > { %p1962_p3 = scmp.lt.s32.totalorder %s1960_s26, %s1956_s22 }
 0x5dd   : > { %p1958_p1 = pnand %p1957_p12, %p2473_p10 }
 0x5de   : > { %p1963_p5 = por %p1962_p3, %p1961_p9 }
 0x5df   : > { %p1959_p2 = pneg %p1958_p1 }
 0x5e1   : > { %p1964_p6 = pnand %p1963_p5, %p1959_p2 }
 0x5e3   : > { %1967 = shalt.err (!%p1964_p6)
}
 0x5e4   : > { %1626 = dma.vmem_to_hbm [thread:$0]  (%p2473_p10), %s1305_s27, 128, %s1302_s20, %s1291_s25  }
 0x5e5 PF: > { %s2474_s17 = sld [smem:[#allocation24_spill]]  ;;  %p1673_p4 = scmp.ge.s32.totalorder %s2022_s23, 2 }
 0x5e6   : > { %s2475_s1 = sld [smem:[#allocation28_spill]] }
 0x5eb   : > { %s1316_s30 = sand.u32 1, %s2474_s17  }
 0x5ec   : > { %p2476_p13 = scmp.ne.s32.totalorder %s2475_s1, 0  ;;  %s1317_s24 = scalar_lea.sflag [#allocation5], %s1316_s30 }
 0x5ee   : > { %p1654_p7 = pnand %p1673_p4, %p2476_p13 }
 0x5f0   : > { %p1655_p8 = pneg %p1654_p7 }
 0x5f2   : > { %2005 = dma.done.wait (%p1655_p8), %s1317_s24, 128  }
 0x5f3   : > { %2007 = vsyncadd (%p1655_p8), %s1317_s24, 4294967168  ;;  %s2477_s23 = sld [smem:[#allocation26_spill]]  ;;  %s2480_s20 = smov %s2014_s21 }
 0x5f4   : > { %s2478_s8 = sld [smem:[#allocation25_spill]] }
 0x5f5   : > { %s2479_s22 = sld [smem:[#allocation27_spill]] }
 0x5f9   : > { %p32_p11 = scmp.ge.s32.totalorder %s2477_s23, 4  }
 0x5fa   : > { %s2481_s21 = smov %s2478_s8 }
 0x5fb   :  { %34 = sbr.rel (!%p32_p11) target bundleno = 11 (0xb), region = 148 }
 0x600   :  { %1322 = vsyncpa [#allocation4], 1 }
 0x601   :  { %1324 = vsyncpa [#allocation4 + $0x1], 1 }
 0x602   :  { %1325 = vsyncpa [#allocation7], 1 }
 0x603   :  { %1326 = vsyncpa [#allocation10], 1 }
 0x604   :  { %1327 = vsyncpa [#allocation13], 1 }
 0x605   :  { %1328 = vsyncpa [#allocation16], 1 }
 0x606   :  { %1329 = vsyncpa [#allocation5], 1 }
 0x607   :  { %1331 = vsyncpa [#allocation5 + $0x1], 1 }

// kernel: tpu_custom_call.1
= control target key start
LH: loop header
LB: loop body
LE: loop exit
PB: predicated region body
PF: predicated region fallthrough
CT: control target
= control target key end

     0   :  { %s2424_s0 = inlined_call_operand.vmem [shape: f32[2,8,128], index: 0, kind: input, shape index: {}]   ;;  %s2425_s1 = inlined_call_operand.hbm [shape: f32[1,128], index: 1, kind: input, shape index: {}]   ;;  %s2426_s2 = inlined_call_operand.hbm [shape: f32[1,128], index: 2, kind: input, shape index: {}]   ;;  %s2427_s3 = inlined_call_operand.hbm [shape: f32[128,128], index: 3, kind: input, shape index: {}]   ;;  %s2428_s4 = inlined_call_operand.hbm [shape: f32[1,128], index: 4, kind: input, shape index: {}]   ;;  %s2429_s5 = inlined_call_operand.hbm [shape: f32[1,128], index: 5, kind: input, shape index: {}]   ;;  %s2430_s6 = inlined_call_operand.hbm [shape: f32[1,128], index: 6, kind: input, shape index: {}]   ;;  %s2431_s7 = inlined_call_operand.hbm [shape: f32[1,128], index: 7, kind: input, shape index: {}]   ;;  %s2432_s8 = inlined_call_operand.<no memory space> [shape: f32[1,1], index: 8, kind: input, shape index: {}]   ;;  %s2433_s9 = inlined_call_operand.vmem [shape: f32[8,8], index: 9, kind: input, shape index: {}]   ;;  %s2434_s10 = inlined_call_operand.vmem [shape: f32[8,1], index: 10, kind: input, shape index: {}]   ;;  %s2435_s11 = inlined_call_operand.vmem [shape: f32[8,8], index: 11, kind: input, shape index: {}]   ;;  %s2436_s12 = inlined_call_operand.vmem [shape: f32[8,1], index: 12, kind: input, shape index: {}]   ;;  %s2437_s13 = inlined_call_operand.hbm [shape: f32[128,128], index: 13, kind: input, shape index: {}]   ;;  %s2438_s14 = inlined_call_operand.vmem [shape: f32[1,128], index: 14, kind: input, shape index: {}]   ;;  %s2439_s15 = inlined_call_operand.hbm [shape: f32[2,8,128], index: 15, kind: output, shape index: {}]  }
   0x1   :  { %2448 = sst [smem:[#allocation29_spill]] %s2425_s1  ;;  %v20_v0 = vstv %s2432_s8 }
   0x2   :  { %2449 = sst [smem:[#allocation30_spill]] %s2426_s2  ;;  %21 = vst [vmem:[#allocation2] sm:$0x1] %v20_v0 }
   0x3   :  { %22 = vsyncpa [#allocation4], 0 }
   0x4   :  { %23 = vsyncpa [#allocation7], 0 }
   0x5   :  { %24 = vsyncpa [#allocation10], 0 }
   0x6   :  { %25 = vsyncpa [#allocation13], 0 }
   0x7   :  { %26 = vsyncpa [#allocation16], 0 }
   0x8   :  { %27 = vsyncpa [#allocation5], 0 }
   0x9   :  { %29 = vsyncpa [#allocation5 + $0x1], 0  ;;  %s2124_s20 = smov 0   ;;  %s2126_s21 = smov 0  }
   0xa   :  { %s2128_s22 = smov 0   ;;  %s2130_s23 = smov 0  }
   0xb LB: > { %2450 = sst [smem:[#allocation24_spill]] %s2010_s20  ;;  %s2145_s8 = sadd.s32 4294967295, %s2022_s23   ;;  %s2022_s23 = sphi %s2130_s23, %s2477_s23   ;;  %s2018_s22 = sphi %s2128_s22, %s2479_s22   ;;  %s2014_s21 = sphi %s2126_s21, %s2481_s21   ;;  %s2010_s20 = sphi %s2124_s20, %s2480_s20  }
   0xc   : > { %2451 = sst [smem:[#allocation25_spill]] %s2018_s22  ;;  %s1442_s24 = sadd.s32 4294967294, %s2022_s23  }
   0xd   : > { %s2149_s25 = sadd.s32 1, %s2022_s23   ;;  %s362_s26 = sadd.s32 1, %s2018_s22 }
   0xe   : > { %2452 = sst [smem:[#allocation26_spill]] %s2149_s25  ;;  %s359_s27 = ssub.s32 %s2022_s23, %s2149_s25 }
   0xf   : > { %p372_p0 = scmp.ne.s32.totalorder %s2018_s22, %s2014_s21  ;;  %p360_p1 = scmp.eq.s32.totalorder %s359_s27, 0 }
  0x10   : > { %p373_p2 = scmp.eq.s32.totalorder %s2145_s8, 1  ;;  %p378_p3 = scmp.ne.s32.totalorder %s2014_s21, %s2010_s20 }
  0x11   : > { %p379_p4 = scmp.eq.s32.totalorder %s1442_s24, 1  ;;  %p1443_p7 = scmp.ge.s32.totalorder %s2022_s23, 1 }
  0x12   : > { %s2160_s28 = scalar_select %p360_p1, %s2018_s22, %s362_s26  }
  0x13   : > { %p2162_p5 = por %p373_p2, %p372_p0  ;;  %p2166_p6 = por %p379_p4, %p378_p3 }
  0x14   : > { %2453 = sst [smem:[#allocation27_spill]] %s2160_s28  ;;  %p386_p8 = scmp.lt.s32.totalorder %s2022_s23, 3 }
  0x15   : > { %s2454_s29 = scalar_select %p2162_p5, 1, 0 }
  0x16   : > { %s2455_s30 = scalar_select %p2166_p6, 1, 0 }
  0x17   : > { %p2444_p9 = scmp.eq.s32.totalorder %s2145_s8, 0  ;;  %p2173_p10 = pnand %p1443_p7, %p386_p8 }
  0x18   : > { %2456 = sst [smem:[#allocation28_spill]] %s2455_s30  ;;  %s2024_s17 = smov [#allocation6]  }
  0x19   : > { %s2457_s16 = scalar_select %p2173_p10, 1, 0 }
  0x1a   : > { %s410_s18 = sshll.u32 %s2024_s17, 4  ;;  %p1628_p11 = pneg %p2173_p10  ;;  %s411_s18 = int_to_ptr.vmem [resolvable:$true] %s410_s18 }
  0x1b   : > { %s2025_s19 = smov [#allocation9]   ;;  %s2026_s27 = smov [#allocation12]  }
  0x1c   : > { %s434_s24 = sshll.u32 %s2025_s19, 4  ;;  %p2181_p12 = pnand %p2444_p9, %p1628_p11  ;;  %s435_s24 = int_to_ptr.vmem [resolvable:$true] %s434_s24 }
  0x1d   : > { %s456_s28 = sshll.u32 %s2026_s27, 4  ;;  %s1745_s17 = scalar_lea.vmem %s411_s18, 16  ;;  %s2185_s28 = int_to_ptr.vmem [resolvable:$true] %s456_s28 }
  0x1e   : > { %p2189_p13 = pneg %p2181_p12  ;;  %p1746_p0 = scmp.ne.s32.totalorder %s411_s18, %s1745_s17 }
  0x1f   : > { %s1752_s19 = scalar_lea.vmem %s411_s18, 32  ;;  %p1753_p3 = scmp.lt.s32.totalorder %s411_s18, %s411_s18 }
  0x20   : > { %p1748_p1 = pnand %p1746_p0, %p2189_p13  ;;  %p1754_p4 = scmp.lt.s32.totalorder %s1752_s19, %s1745_s17 }
  0x22   : > { %p1749_p2 = pneg %p1748_p1  ;;  %p1755_p7 = por %p1754_p4, %p1753_p3 }
  0x24   : > { %p1756_p8 = pnand %p1755_p7, %p1749_p2 }
  0x26   : > { %1759 = shalt.err (!%p1756_p8)
}
  0x27   : > { %s2460_s2 = sld [smem:[#allocation30_spill]]  ;;  %s1771_s30 = scalar_lea.vmem %s435_s24, 16 }
  0x28   : > { %p1772_p11 = scmp.ne.s32.totalorder %s435_s24, %s1771_s30  ;;  %s1778_s20 = scalar_lea.vmem %s435_s24, 32 }
  0x29   : > { %p1779_p0 = scmp.lt.s32.totalorder %s435_s24, %s435_s24  ;;  %p1780_p1 = scmp.lt.s32.totalorder %s1778_s20, %s1771_s30 }
  0x2a   : > { %p1774_p9 = pnand %p1772_p11, %p2189_p13 }
  0x2b   : > { %p1781_p5 = por %p1780_p1, %p1779_p0 }
  0x2c   : > { %p1775_p6 = pneg %p1774_p9 }
  0x2d   : > { %1634 = dma.hbm_to_vmem [thread:$0]  (!%p2181_p12), %s2460_s2, 16, %s411_s18, [#allocation7]  }
  0x2e   : > { %p1782_p10 = pnand %p1781_p5, %p1775_p6 }
  0x30   : > { %1785 = shalt.err (!%p1782_p10)
}
  0x31   : > { %1640 = dma.hbm_to_vmem [thread:$0]  (!%p2181_p12), %s2428_s4, 16, %s435_s24, [#allocation10]  }
  0x32   : > { %s1797_s25 = scalar_lea.vmem %s2185_s28, 16  ;;  %s1804_s20 = scalar_lea.vmem %s2185_s28, 32 }
  0x33   : > { %p1798_p2 = scmp.ne.s32.totalorder %s2185_s28, %s1797_s25  ;;  %p1805_p5 = scmp.lt.s32.totalorder %s2185_s28, %s2185_s28 }
  0x34   : > { %p1806_p6 = scmp.lt.s32.totalorder %s1804_s20, %s1797_s25 }
  0x35   : > { %p1800_p9 = pnand %p1798_p2, %p2189_p13 }
  0x36   : > { %p1807_p10 = por %p1806_p6, %p1805_p5 }
  0x37   : > { %p1801_p3 = pneg %p1800_p9 }
  0x39   : > { %p1808_p4 = pnand %p1807_p10, %p1801_p3 }
  0x3b   : > { %1811 = shalt.err (!%p1808_p4)
}
  0x3c   : > { %1646 = dma.hbm_to_vmem [thread:$0]  (!%p2181_p12), %s2430_s6, 16, %s2185_s28, [#allocation13]  }
  0x3d   : > { %s2027_s24 = smov [#allocation3]   ;;  %s2028_s17 = smov [#allocation8]  }
  0x3e   : > { %s399_s27 = sshll.u32 %s2027_s24, 4  ;;  %s420_s19 = sshll.u32 %s2028_s17, 4  ;;  %s400_s27 = int_to_ptr.vmem [resolvable:$true] %s399_s27  ;;  %s421_s19 = int_to_ptr.vmem [resolvable:$true] %s420_s19 }
  0x3f   : > { %s1823_s2 = scalar_lea.vmem %s400_s27, 16  ;;  %s1830_s25 = scalar_lea.vmem %s400_s27, 32 }
  0x40   : > { %p1824_p7 = scmp.ne.s32.totalorder %s400_s27, %s1823_s2  ;;  %p1831_p0 = scmp.lt.s32.totalorder %s400_s27, %s400_s27 }
  0x41   : > { %p1832_p1 = scmp.lt.s32.totalorder %s1830_s25, %s1823_s2 }
  0x42   : > { %p1826_p8 = pnand %p1824_p7, %p2189_p13 }
  0x43   : > { %p1833_p2 = por %p1832_p1, %p1831_p0 }
  0x44   : > { %p1827_p11 = pneg %p1826_p8 }
  0x46   : > { %p1834_p9 = pnand %p1833_p2, %p1827_p11 }
  0x48   : > { %1837 = shalt.err (!%p1834_p9)
}
  0x49   : > { %s2461_s1 = sld [smem:[#allocation29_spill]]  ;;  %s1849_s30 = scalar_lea.vmem %s421_s19, 2048 }
  0x4a   : > { %p1850_p3 = scmp.ne.s32.totalorder %s421_s19, %s1849_s30  ;;  %p1857_p10 = scmp.lt.s32.totalorder %s421_s19, %s421_s19 }
  0x4b   : > { %p1858_p4 = scmp.lt.s32.totalorder %s1849_s30, %s1849_s30 }
  0x4c   : > { %p1852_p5 = pnand %p1850_p3, %p2189_p13 }
  0x4d   : > { %p1859_p7 = por %p1858_p4, %p1857_p10 }
  0x4e   : > { %p1853_p6 = pneg %p1852_p5 }
  0x4f   : > { %1631 = dma.hbm_to_vmem [thread:$0]  (!%p2181_p12), %s2461_s1, 16, %s400_s27, [#allocation4]  }
  0x50   : > { %p1860_p8 = pnand %p1859_p7, %p1853_p6 }
  0x52   : > { %1863 = shalt.err (!%p1860_p8)
}
  0x53   : > { %s2029_s2 = smov 128   ;;  %s2030_s18 = smov 8  }
  0x54   : > { %1637 = dma.hbm_to_vmem [thread:$0]  (!%p2181_p12), %s2427_s3, 2048, %s421_s19, [#allocation7], %s2029_s2, %s2029_s2, %s2030_s18  }
  0x55   : > { %s2031_s17 = smov [#allocation11]   ;;  %s2032_s20 = smov [#allocation14]  }
  0x56   : > { %s445_s25 = sshll.u32 %s2031_s17, 4  ;;  %s467_s28 = sshll.u32 %s2032_s20, 4  ;;  %s446_s25 = int_to_ptr.vmem [resolvable:$true] %s445_s25  ;;  %s468_s28 = int_to_ptr.vmem [resolvable:$true] %s467_s28 }
  0x57   : > { %s1875_s30 = scalar_lea.vmem %s446_s25, 16  ;;  %s1882_s1 = scalar_lea.vmem %s446_s25, 32 }
  0x58   : > { %p1876_p11 = scmp.ne.s32.totalorder %s446_s25, %s1875_s30  ;;  %p1883_p2 = scmp.lt.s32.totalorder %s446_s25, %s446_s25 }
  0x59   : > { %p1884_p9 = scmp.lt.s32.totalorder %s1882_s1, %s1875_s30 }
  0x5a   : > { %p1878_p0 = pnand %p1876_p11, %p2189_p13 }
  0x5b   : > { %p1885_p3 = por %p1884_p9, %p1883_p2 }
  0x5c   : > { %p1879_p1 = pneg %p1878_p0 }
  0x5e   : > { %p1886_p5 = pnand %p1885_p3, %p1879_p1 }
  0x60   : > { %1889 = shalt.err (!%p1886_p5)
}
  0x61   : > { %1643 = dma.hbm_to_vmem [thread:$0]  (!%p2181_p12), %s2429_s5, 16, %s446_s25, [#allocation10]  }
  0x62   : > { %s1901_s27 = scalar_lea.vmem %s468_s28, 16  ;;  %s1908_s17 = scalar_lea.vmem %s468_s28, 32 }
  0x63   : > { %p1902_p6 = scmp.ne.s32.totalorder %s468_s28, %s1901_s27  ;;  %p1909_p7 = scmp.lt.s32.totalorder %s468_s28, %s468_s28 }
  0x64   : > { %p1910_p8 = scmp.lt.s32.totalorder %s1908_s17, %s1901_s27 }
  0x65   : > { %p1904_p10 = pnand %p1902_p6, %p2189_p13 }
  0x66   : > { %p1911_p11 = por %p1910_p8, %p1909_p7 }
  0x67   : > { %p1905_p4 = pneg %p1904_p10 }
  0x69   : > { %p1912_p0 = pnand %p1911_p11, %p1905_p4 }
  0x6b   : > { %1915 = shalt.err (!%p1912_p0)
}
  0x6c   : > { %1649 = dma.hbm_to_vmem [thread:$0]  (!%p2181_p12), %s2431_s7, 16, %s468_s28, [#allocation13]  }
  0x6d   : > { %s2033_s25 = smov [#allocation15]  }
  0x6e   : > { %s492_s30 = sshll.u32 %s2033_s25, 4  ;;  %s493_s30 = int_to_ptr.vmem [resolvable:$true] %s492_s30 }
  0x6f   : > { %s1927_s24 = scalar_lea.vmem %s493_s30, 2048  ;;  %p1935_p3 = scmp.lt.s32.totalorder %s493_s30, %s493_s30 }
  0x70   : > { %p1928_p1 = scmp.ne.s32.totalorder %s493_s30, %s1927_s24  ;;  %p1936_p5 = scmp.lt.s32.totalorder %s1927_s24, %s1927_s24 }
  0x72   : > { %p1930_p2 = pnand %p1928_p1, %p2189_p13  ;;  %p1937_p6 = por %p1936_p5, %p1935_p3 }
  0x74   : > { %p1931_p9 = pneg %p1930_p2 }
  0x76   : > { %p1938_p10 = pnand %p1937_p6, %p1931_p9 }
  0x78   : > { %1941 = shalt.err (!%p1938_p10)
}
  0x79   : > { %1652 = dma.hbm_to_vmem [thread:$0]  (!%p2181_p12), %s2437_s13, 2048, %s493_s30, [#allocation16], %s2029_s2, %s2029_s2, %s2030_s18  }
  0x7a   : > { %p2462_p4 = scmp.ne.s32.totalorder %s2457_s16, 0 }
  0x7b   : > { %p2463_p13 = scmp.eq.s32.totalorder (!%p2462_p4), %s2145_s8, 0 }
  0x7c   : > { %518 = sbr.rel (%p2462_p4) target bundleno = 1509 (0x5e5), region = 80 }
  0x81   : > { %1985 = dma.done.wait (%p2463_p13), [#allocation4], 16   ;;  %p2464_p7 = pmov %p2463_p13 }
  0x83   : > { %1987 = vsyncadd (%p2464_p7), [#allocation4], 4294967280  ;;  %p2465_p8 = pmov %p2464_p7 }
  0x84   : > { %p2466_p11 = pmov %p2464_p7 }
  0x85   : > { %1989 = dma.done.wait (%p2465_p8), [#allocation7], 2064  }
  0x86   : > { %1991 = vsyncadd (%p2466_p11), [#allocation7], 4294965232  ;;  %p2467_p0 = pmov %p2464_p7 }
  0x88   : > { %1993 = dma.done.wait (%p2467_p0), [#allocation10], 32   ;;  %p2468_p12 = pmov %p2467_p0 }
  0x89   : > { %p2469_p1 = pmov %p2467_p0 }
  0x8a   : > { %1995 = vsyncadd (%p2468_p12), [#allocation10], 4294967264 }
  0x8b   : > { %1997 = dma.done.wait (%p2469_p1), [#allocation13], 32   ;;  %p2470_p2 = pmov %p2467_p0 }
  0x8c   : > { %p2471_p9 = pmov %p2467_p0 }
  0x8d   : > { %1999 = vsyncadd (%p2470_p2), [#allocation13], 4294967264 }
  0x8e   : > { %2001 = dma.done.wait (%p2471_p9), [#allocation16], 2048   ;;  %p2472_p3 = pmov %p2467_p0 }
  0x8f   : > { %p593_p5 = scmp.lt.s32.totalorder %s2145_s8, 1  ;;  %v645_v2 = vld [vmem:[#allocation8 + $0x78] sm:$0xff]  ;;  %v2034_v3 = vmov 0.0   ;;  %v644_v4 = vld [vmem:[#allocation8 + $0x70] sm:$0xff]  ;;  %v643_v5 = vld [vmem:[#allocation8 + $0x68] sm:$0xff]  ;;  %v605_v7 = vlaneseq  ;;  %vm2035_vm1 = vmmov 0  }
  0x90   : > { %2003 = vsyncadd (%p2472_p3), [#allocation16], 4294965248  ;;  %1514 = vmatprep.subr.mxu0 %v2034_v3  ;;  %1554 = vmatprep.subr.mxu1 %v2034_v3  ;;  %v642_v6 = vld [vmem:[#allocation8 + $0x60] sm:$0xff]  ;;  %v641_v14 = vld [vmem:[#allocation8 + $0x58] sm:$0xff]  ;;  %v2036_v52 = vmov 1983009808  }
  0x91   : > { %s594_s22 = scalar_select %p593_p5, %s2145_s8, 1  ;;  %1515 = vmatpush3.msra.mxu0 %v645_v2  ;;  %v2298_v9 = vand.u32 127, %v605_v7  ;;  %v640_v15 = vld [vmem:[#allocation8 + $0x50] sm:$0xff]  ;;  %v639_v16 = vld [vmem:[#allocation8 + $0x48] sm:$0xff]  ;;  %v638_v17 = vld [vmem:[#allocation8 + $0x40] sm:$0xff]  ;;  %1546 = vmatprep.mubr.msk.f32.mxu0 %vm2035_vm1, %v2034_v3  ;;  %v771_v53 = vunpack.c.l.s4 %v2036_v52  ;;  %v2326_v57 = vshrl.u32 %v605_v7, 7 }
  0x92   : > { %1516 = vmatprep.subr.mxu0 %v2034_v3  ;;  %v637_v18 = vld [vmem:[#allocation8 + $0x38] sm:$0xff]  ;;  %1556 = vmatprep.mubr.msk.f32.mxu1 %vm2035_vm1, %v2034_v3  ;;  %v636_v19 = vld [vmem:[#allocation8 + $0x30] sm:$0xff]  ;;  %v635_v20 = vld [vmem:[#allocation8 + $0x28] sm:$0xff]  ;;  %v2037_v54 = vmov 1934713408   ;;  %vm761_vm3 = vcmask 1040384  }
  0x93   : > { %s1463_s16 = sshll.u32 %s594_s22, 3  ;;  %1517 = vmatpush3.msra.mxu0 %v644_v4  ;;  %vm607_vm0 = vcmp.lt.s32.totalorder %v2298_v9, 32  ;;  %v634_v21 = vld [vmem:[#allocation8 + $0x20] sm:$0xff]  ;;  %v633_v22 = vld [vmem:[#allocation8 + $0x18] sm:$0xff]  ;;  %v632_v23 = vld [vmem:[#allocation8 + $0x10] sm:$0xff]  ;;  %vm736_vm2 = vcmp.lt.s32.totalorder %v2298_v9, 64  ;;  %v786_v55 = vunpack.c.l.s4 %v2037_v54  ;;  %v772_v56 = vunpack.c.0.s8 %v771_v53 }
  0x94   : > { %s596_s18 = scalar_lea.vmem %s2424_s0, %s1463_s16  ;;  %1518 = vmatprep.subr.mxu0 %v2034_v3  ;;  %v631_v24 = vld [vmem:[#allocation8 + $0x8] sm:$0xff]  ;;  %v630_v25 = vld [vmem:[#allocation8] sm:$0xff]  ;;  %v1464_v30 = vld [vmem:[#allocation3] ss:$0 sm:$0xff]  ;;  %vm828_vm4 = vcmask 1041409   ;;  %vm831_vm5 = vcmask 1042434  }
  0x95   : > { %v2288_v1 = vld [vmem:[%s596_s18] sm:$0xff]  ;;  %1519 = vmatpush3.msra.mxu0 %v643_v5  ;;  %v787_v60 = vunpack.c.0.s8 %v786_v55  ;;  %v1468_v62 = vld [vmem:[#allocation12] ss:$0 sm:$0xff]  ;;  %v2329_v63 = vsub.s32 %v772_v56, %v2326_v57  ;;  %v759_v2 = vld [vmem:[#allocation14] sm:$0x1]  ;;  %vm834_vm6 = vcmask 1043459  }
  0x96   : > { %600 = vadd.xlane.f32.xlu0 %v2288_v1  ;;  %1520 = vmatprep.subr.mxu0 %v2034_v3  ;;  %v1465_v32 = vld [vmem:[#allocation6] ss:$0 sm:$0xff]  ;;  %v1466_v35 = vld [vmem:[#allocation9] ss:$0 sm:$0xff]  ;;  %v1467_v59 = vld [vmem:[#allocation11] ss:$0 sm:$0xff] }
  0x97   : > { %1521 = vmatpush3.msra.mxu0 %v642_v6  ;;  %v2332_v4 = vsub.s32 %v787_v60, %v2326_v57  ;;  %vm837_vm7 = vcmask 1044484   ;;  %vm840_vm8 = vcmask 1045509   ;;  %vm843_vm9 = vcmask 1046534   ;;  %v1207_v52 = vld [vmem:[#allocation15 + $0x60] sm:$0xff]  ;;  %v1206_v53 = vld [vmem:[#allocation15 + $0x58] sm:$0xff]  ;;  %v1205_v54 = vld [vmem:[#allocation15 + $0x50] sm:$0xff] }
  0x98   : > { %1522 = vmatprep.subr.mxu0 %v2034_v3  ;;  %vm846_vm10 = vcmask 1047559   ;;  %vm849_vm11 = vcmask 64512   ;;  %v1204_v55 = vld [vmem:[#allocation15 + $0x48] sm:$0xff]  ;;  %v1203_v56 = vld [vmem:[#allocation15 + $0x40] sm:$0xff]  ;;  %s590_s28 = sand.u32 1, %s2014_s21   ;;  %s1473_s2 = sshll.u32 %s2145_s8, 7 }
  0x99   : > { %1523 = vmatpush3.msra.mxu0 %v641_v14  ;;  %v1200_v60 = vld [vmem:[#allocation15 + $0x28] sm:$0xff]  ;;  %s1462_s22 = sshll.u32 %s590_s28, 3  ;;  %s1302_s20 = scalar_lea.hbm %s2439_s15, %s1473_s2 }
  0x9a   : > { %1524 = vmatprep.subr.mxu0 %v2034_v3  ;;  %s592_s18 = scalar_lea.vmem [#allocation17], %s1462_s22  ;;  %s1291_s25 = scalar_lea.sflag [#allocation5], %s590_s28 }
  0x9b   : > { %1525 = vmatpush3.msra.mxu0 %v640_v15  ;;  %s1304_s27 = sshll.u32 %s592_s18, 4  ;;  %p2473_p10 = scmp.ne.s32.totalorder %s2454_s29, 0  ;;  %s1305_s27 = int_to_ptr.vmem [resolvable:$true] %s1304_s27 }
  0x9c   : > { %1526 = vmatprep.subr.mxu0 %v2034_v3  ;;  %s1942_s30 = scalar_lea.vmem %s1305_s27, 128  ;;  %s2040_s24 = smov [#allocation17]  }
  0x9d   : > { %1527 = vmatpush3.msra.mxu0 %v639_v16  ;;  %p1943_p6 = scmp.ne.s32.totalorder %s1305_s27, %s1942_s30  ;;  %s1946_s8 = sshll.u32 %s2040_s24, 4  ;;  %s1947_s8 = int_to_ptr.vmem [resolvable:$false] %s1946_s8 }
  0x9e   : > { %1528 = vmatprep.subr.mxu0 %v2034_v3  ;;  %s1948_s19 = scalar_lea.vmem %s1947_s8, 256  ;;  %p1949_p7 = scmp.lt.s32.totalorder %s1305_s27, %s1947_s8 }
  0x9f   : > { %1529 = vmatpush3.msra.mxu0 %v638_v17  ;;  %p1944_p4 = pnand %p1943_p6, %p2473_p10  ;;  %p1950_p8 = scmp.lt.s32.totalorder %s1948_s19, %s1942_s30 }
  0xa0   : > { %1530 = vmatprep.subr.mxu0 %v2034_v3 }
  0xa1   : > { %1531 = vmatpush3.msra.mxu0 %v637_v18  ;;  %p1945_p13 = pneg %p1944_p4  ;;  %p1951_p11 = por %p1950_p8, %p1949_p7 }
  0xa2   : > { %1532 = vmatprep.subr.mxu0 %v2034_v3 }
  0xa3   : > { %1533 = vmatpush3.msra.mxu0 %v636_v19  ;;  %p1952_p0 = pnand %p1951_p11, %p1945_p13 }
  0xa4   : > { %1534 = vmatprep.subr.mxu0 %v2034_v3 }
  0xa5   : > { %1535 = vmatpush3.msra.mxu0 %v635_v20 }
  0xa6   : > { %1536 = vmatprep.subr.mxu0 %v2034_v3 }
  0xa7   : > { %1537 = vmatpush3.msra.mxu0 %v634_v21 }
  0xa8   : > { %1538 = vmatprep.subr.mxu0 %v2034_v3 }
  0xa9   : > { %1539 = vmatpush3.msra.mxu0 %v633_v22 }
  0xaa   : > { %1540 = vmatprep.subr.mxu0 %v2034_v3 }
  0xab   : > { %1541 = vmatpush3.msra.mxu0 %v632_v23 }
  0xac   : > { %1542 = vmatprep.subr.mxu0 %v2034_v3 }
  0xad   : > { %1543 = vmatpush3.msra.mxu0 %v631_v24 }
  0xae   : > { %1544 = vmatprep.subr.mxu0 %v2034_v3 }
  0xaf   : > { %1545 = vmatpush3.msra.mxu0 %v630_v25 }
  0xb0   : > { %1549 = vmatprep.subr.mxu0 %v2034_v3 }
 0x11f   : > { %v601_v8 = vpop.xlane.xlu0 %600 }
 0x120   : > { %v603_v10 = vmul.f32 0.03125, %v601_v8 }
 0x122   : > { %v604_v11 = vsub.f32 %v2288_v1, %v603_v10 }
 0x124   : > { %v608_v12 = vmul.f32 %v604_v11, %v604_v11 }
 0x126   : > { %v609_v13 = vsel %vm607_vm0, %v608_v12, 0.0 }
 0x127   : > { %610 = vadd.xlane.f32.xlu0 %v609_v13 }
 0x1b0   : > { %v611_v26 = vpop.xlane.xlu0 %610 }
 0x1b1   : > { %v612_v27 = vmul.f32 0.03125, %v611_v26 }
 0x1b3   : > { %v613_v28 = vadd.f32 1e-05, %v612_v27 }
 0x1b5   : > { %1724 = vrsqrt.f32 %v613_v28 }
 0x1c2   : > { %v1725_v29 = vpop.eup %1724 }
 0x1c3   : > { %v615_v31 = vmul.f32 %v1725_v29, %v604_v11 }
 0x1c5   : > { %v622_v33 = vmul.f32 %v1464_v30, %v615_v31 }
 0x1c7   : > { %v629_v34 = vadd.f32 %v1465_v32, %v622_v33 }
 0x1c9   : > { %1547 = vmatmul.mubr.f32.vlgmr.msra.gmra.mxu0 %v629_v34  ;;  %v818_v34 = vld [vmem:[%s2433_s9] sm:$0xff] }
 0x1ca   : > { %1551 = vmatprep.mubr.msk.f32.mxu0 %vm2035_vm1, %v2034_v3 }
 0x289   : > { %v719_v36 = vpop.f32.mrf.mxu0 }
 0x28a   : > { %v720_v37 = vadd.f32 %v1466_v35, %v719_v36  ;;  %v981_v35 = vld [vmem:[%s2435_s11] sm:$0xff] }
 0x28b   : > { %v1548_v38 = vpop.f32.mrf.mxu0 }
 0x28c   : > { %v725_v39 = vmul.f32 0.70710677, %v720_v37  ;;  %v723_v41 = vmul.f32 0.5, %v720_v37  ;;  %v2038_v37 = vmov 0   ;;  %v765_v38 = vld [vmem:[#allocation2] sm:$0x1] }
 0x28d   : > { %1722 = vset.pattern.permute.xlu1 %v2038_v37  ;;  %1723 = vset.pattern.permute.xlu0 %v2038_v37 }
 0x28e   : > { %1726 = verf.f32 %v725_v39 }
 0x29b   : > { %v1727_v40 = vpop.eup %1726 }
 0x29c   : > { %v727_v42 = vadd.f32 1.0, %v1727_v40 }
 0x29e   : > { %v2320_v43 = vmul.f32 %v727_v42, %v723_v41  ;;  %v1130_v41 = vsub.s32 0, %v2326_v57 }
 0x2a0   : > { %731 = vadd.xlane.f32.xlu1 %v2320_v43 }
 0x329   : > { %v732_v44 = vpop.xlane.xlu1 %731 }
 0x32a   : > { %v734_v45 = vmul.f32 0.015625, %v732_v44 }
 0x32c   : > { %v735_v46 = vsub.f32 %v2320_v43, %v734_v45 }
 0x32e   : > { %v737_v47 = vmul.f32 %v735_v46, %v735_v46 }
 0x330   : > { %v738_v48 = vsel %vm736_vm2, %v737_v47, 0.0  ;;  %v1127_v47 = vld [vmem:[%s2434_s10] sm:$0xff] }
 0x331   : > { %739 = vadd.xlane.f32.xlu1 %v738_v48  ;;  %v1210_v48 = vld [vmem:[#allocation15 + $0x78] sm:$0xff] }
 0x3ba   : > { %v740_v49 = vpop.xlane.xlu1 %739 }
 0x3bb   : > { %v741_v50 = vmul.f32 0.015625, %v740_v49 }
 0x3bd   : > { %v742_v51 = vadd.f32 1e-05, %v741_v50  ;;  %v1209_v50 = vld [vmem:[#allocation15 + $0x70] sm:$0xff] }
 0x3bf   : > { %1728 = vrsqrt.f32 %v742_v51  ;;  %v1208_v51 = vld [vmem:[#allocation15 + $0x68] sm:$0xff] }
 0x3cc   : > { %v1729_v58 = vpop.eup %1728 }
 0x3cd   : > { %v744_v61 = vmul.f32 %v1729_v58, %v735_v46  ;;  %v1126_v46 = vld [vmem:[%s2436_s12] sm:$0xff] }
 0x3ce   : > { %v1202_v58 = vld [vmem:[#allocation15 + $0x38] sm:$0xff] }
 0x3cf   : > { %v751_v0 = vmul.f32 %v1467_v59, %v744_v61  ;;  %v1201_v59 = vld [vmem:[#allocation15 + $0x30] sm:$0xff]  ;;  %v1199_v61 = vld [vmem:[#allocation15 + $0x20] sm:$0xff] }
 0x3d1   : > { %v758_v5 = vadd.f32 %v1468_v62, %v751_v0  ;;  %v1198_v62 = vld [vmem:[#allocation15 + $0x18] sm:$0xff]  ;;  %v1197_v0 = vld [vmem:[#allocation15 + $0x10] sm:$0xff] }
 0x3d3   : > { %v760_v6 = vmul.f32 %v759_v2, %v758_v5  ;;  %v769_v8 = vcombine.high %v758_v5, %v2034_v3  ;;  %v776_v7 = vrot.slane %v758_v5, %v2329_v63  ;;  %v1196_v2 = vld [vmem:[#allocation15 + $0x8] sm:$0xff]  ;;  %v1195_v5 = vld [vmem:[#allocation15] sm:$0xff] }
 0x3d5   : > { %v762_v9 = vsel %vm761_vm3, %v760_v6, 0.0  ;;  %v783_v10 = vrot.slane %v769_v8, %v2329_v63  ;;  %v784_v11 = vcombine.high %v776_v7, %v2034_v3  ;;  %v791_v12 = vrot.slane %v776_v7, %v2332_v4 }
 0x3d6   : > { %763 = vadd.xlane.f32.xlu0 %v762_v9 }
 0x3d7   : > { %v798_v13 = vrot.slane %v784_v11, %v2332_v4  ;;  %v814_v14 = vcombine.high %v791_v12, %v2034_v3  ;;  %v799_v15 = vcombine.high %v783_v10, %v2034_v3  ;;  %v806_v16 = vrot.slane %v783_v10, %v2332_v4 }
 0x3d8   : > { %v2039_v10 = vmov 1966171168  }
 0x3d9   : > { %v827_v17 = vrot.slane %v814_v14, 7  ;;  %v830_v18 = vrot.slane %v798_v13, 6  ;;  %v813_v19 = vrot.slane %v799_v15, %v2332_v4  ;;  %v815_v20 = vcombine.high %v798_v13, %v2034_v3 }
 0x3da   : > { %v816_v21 = vcombine.high %v806_v16, %v2034_v3  ;;  %v836_v26 = vrot.slane %v806_v16, 4  ;;  %v926_v11 = vunpack.c.l.s4 %v2039_v10 }
 0x3db   : > { %v817_v22 = vcombine.high %v813_v19, %v2034_v3  ;;  %v829_v23 = vsel %vm828_vm4, %v827_v17, %v791_v12  ;;  %v833_v24 = vrot.slane %v815_v20, 5  ;;  %v842_v30 = vrot.slane %v813_v19, 2 }
 0x3dc   : > { %v832_v25 = vsel %vm831_vm5, %v830_v18, %v829_v23  ;;  %v839_v28 = vrot.slane %v816_v21, 3  ;;  %v927_v12 = vunpack.c.0.s8 %v926_v11 }
 0x3dd   : > { %v835_v27 = vsel %vm834_vm6, %v833_v24, %v832_v25  ;;  %v845_v32 = vrot.slane %v817_v22, 1 }
 0x3de   : > { %v838_v29 = vsel %vm837_vm7, %v836_v26, %v835_v27  ;;  %v930_v15 = vsub.s32 %v927_v12, %v2326_v57 }
 0x3df   : > { %v841_v31 = vsel %vm840_vm8, %v839_v28, %v838_v29 }
 0x3e0   : > { %v844_v33 = vsel %vm843_vm9, %v842_v30, %v841_v31 }
 0x3e1   : > { %v847_v36 = vsel %vm846_vm10, %v845_v32, %v844_v33 }
 0x3e2   : > { %1550 = vmatpush3.msra.mxu0 %v847_v36  ;;  %1555 = vmatpush3.msra.mxu1 %v847_v36 }
 0x3e3   : > { %1552 = vmatmul.mubr.msk.f32.vlgmr.msra.gmra.mxu0 %vm849_vm11, %v818_v34  ;;  %1557 = vmatmul.mubr.msk.f32.vlgmr.msra.gmra.mxu1 %vm849_vm11, %v981_v35 }
 0x3e4   : > { %1559 = vmatprep.subr.mxu1 %v2034_v3  ;;  %1591 = vmatprep.mubr.msk.f32.mxu1 %vm2035_vm1, %v2034_v3 }
 0x3e5   : > { %1560 = vmatpush3.msra.mxu1 %v1210_v48 }
 0x3e6   : > { %1561 = vmatprep.subr.mxu1 %v2034_v3 }
 0x3e7   : > { %1562 = vmatpush3.msra.mxu1 %v1209_v50 }
 0x3e8   : > { %1563 = vmatprep.subr.mxu1 %v2034_v3 }
 0x3e9   : > { %1564 = vmatpush3.msra.mxu1 %v1208_v51 }
 0x3ea   : > { %1565 = vmatprep.subr.mxu1 %v2034_v3 }
 0x3eb   : > { %1566 = vmatpush3.msra.mxu1 %v1207_v52 }
 0x3ec   : > { %1567 = vmatprep.subr.mxu1 %v2034_v3 }
 0x3ed   : > { %1568 = vmatpush3.msra.mxu1 %v1206_v53 }
 0x3ee   : > { %1569 = vmatprep.subr.mxu1 %v2034_v3 }
 0x3ef   : > { %1570 = vmatpush3.msra.mxu1 %v1205_v54 }
 0x3f0   : > { %1571 = vmatprep.subr.mxu1 %v2034_v3 }
 0x3f1   : > { %1572 = vmatpush3.msra.mxu1 %v1204_v55 }
 0x3f2   : > { %1573 = vmatprep.subr.mxu1 %v2034_v3 }
 0x3f3   : > { %1574 = vmatpush3.msra.mxu1 %v1203_v56 }
 0x3f4   : > { %1575 = vmatprep.subr.mxu1 %v2034_v3 }
 0x3f5   : > { %1576 = vmatpush3.msra.mxu1 %v1202_v58 }
 0x3f6   : > { %1577 = vmatprep.subr.mxu1 %v2034_v3 }
 0x3f7   : > { %1578 = vmatpush3.msra.mxu1 %v1201_v59 }
 0x3f8   : > { %1579 = vmatprep.subr.mxu1 %v2034_v3 }
 0x3f9   : > { %1580 = vmatpush3.msra.mxu1 %v1200_v60 }
 0x3fa   : > { %1581 = vmatprep.subr.mxu1 %v2034_v3 }
 0x3fb   : > { %1582 = vmatpush3.msra.mxu1 %v1199_v61 }
 0x3fc   : > { %1583 = vmatprep.subr.mxu1 %v2034_v3 }
 0x3fd   : > { %1584 = vmatpush3.msra.mxu1 %v1198_v62 }
 0x3fe   : > { %1585 = vmatprep.subr.mxu1 %v2034_v3 }
 0x3ff   : > { %1586 = vmatpush3.msra.mxu1 %v1197_v0 }
 0x400   : > { %1587 = vmatprep.subr.mxu1 %v2034_v3 }
 0x401   : > { %1588 = vmatpush3.msra.mxu1 %v1196_v2 }
 0x402   : > { %1589 = vmatprep.subr.mxu1 %v2034_v3 }
 0x403   : > { %1590 = vmatpush3.msra.mxu1 %v1195_v5 }
 0x45f   : > { %v764_v39 = vpop.xlane.xlu0 %763 }
 0x460   : > { %v766_v40 = vadd.f32 %v765_v38, %v764_v39 }
 0x462   : > { %1730 = vtanh.f32 %v766_v40 }
 0x46f   : > { %v1731_v42 = vpop.eup %1730 }
 0x470   : > { %vm768_vm12 = vcmp.ge.f32.partialorder %v1731_v42, 0.0 }
 0x471   : > { %v1113_v44 = vsel %vm768_vm12, 1, %v2038_v37 }
 0x472   : > { %1115 = vperm.xlu1 %1722, %v1113_v44   ;;  %v1131_v45 = vrot.slane %v1113_v44, %v1130_v41 }
 0x474   : > { %vm1132_vm13 = vcmp.eq.s32.totalorder %v1131_v45, 1 }
 0x475   : > { %v1133_v49 = vsel %vm1132_vm13, %v1126_v46, %v1127_v47 }
 0x476   : > { %1185 = vperm.xlu0 %1723, %v1133_v49  }
 0x4a3   : > { %v919_v6 = vpop.f32.mrf.mxu0  ;;  %v1051_v8 = vpop.f32.mrf.mxu1 }
 0x4a4   : > { %v924_v13 = vcombine.high %v919_v6, %v919_v6  ;;  %v1056_v14 = vcombine.high %v1051_v8, %v1051_v8  ;;  %v931_v18 = vrot.slane %v919_v6, %v930_v15  ;;  %v1063_v19 = vrot.slane %v1051_v8, %v930_v15 }
 0x4a5   : > { %v1553_v7 = vpop.f32.mrf.mxu0  ;;  %v1558_v9 = vpop.f32.mrf.mxu1 }
 0x4a6   : > { %v938_v16 = vrot.slane %v924_v13, %v930_v15  ;;  %v1070_v17 = vrot.slane %v1056_v14, %v930_v15  ;;  %v939_v3 = vcombine.high %v931_v18, %v931_v18  ;;  %v1071_v22 = vcombine.high %v1063_v19, %v1063_v19 }
 0x4a7   : > { %v947_v25 = vrot.slane %v931_v18, %v930_v15  ;;  %v1079_v27 = vrot.slane %v1063_v19, %v930_v15 }
 0x4a8   : > { %v940_v20 = vcombine.high %v938_v16, %v938_v16  ;;  %v1072_v21 = vcombine.high %v1070_v17, %v1070_v17  ;;  %v961_v26 = vrot.slane %v939_v3, %v930_v15  ;;  %v1093_v28 = vrot.slane %v1071_v22, %v930_v15 }
 0x4a9   : > { %v954_v29 = vrot.slane %v938_v16, %v930_v15  ;;  %v1086_v30 = vrot.slane %v1070_v17, %v930_v15  ;;  %v969_v33 = vcombine.high %v947_v25, %v947_v25  ;;  %v1101_v34 = vcombine.high %v1079_v27, %v1079_v27 }
 0x4aa   : > { %v968_v23 = vrot.slane %v940_v20, %v930_v15  ;;  %v1100_v24 = vrot.slane %v1072_v21, %v930_v15  ;;  %v971_v57 = vcombine.high %v961_v26, %v961_v26  ;;  %v1103_v35 = vcombine.high %v1093_v28, %v1093_v28 }
 0x4ab   : > { %v970_v37 = vcombine.high %v954_v29, %v954_v29  ;;  %v1102_v38 = vcombine.high %v1086_v30, %v1086_v30 }
 0x4ac   : > { %v972_v31 = vcombine.high %v968_v23, %v968_v23  ;;  %v1104_v32 = vcombine.high %v1100_v24, %v1100_v24 }
 0x4ed   : > { %v1116_v36 = vpop.permute.xlu1 %1115 }
 0x4ee   : > { %vm1117_vm14 = vcmp.eq.s32.totalorder %v1116_v36, 1 }
 0x4ef   : > { %v1118_v39 = vsel %vm1117_vm14, %v1079_v27, %v947_v25  ;;  %v1119_v40 = vsel %vm1117_vm14, %v1093_v28, %v961_v26  ;;  %v1120_v41 = vsel %vm1117_vm14, %v1101_v34, %v969_v33  ;;  %v1121_v42 = vsel %vm1117_vm14, %v1103_v35, %v971_v57 }
 0x4f0   : > { %v1122_v44 = vsel %vm1117_vm14, %v1086_v30, %v954_v29  ;;  %v1123_v45 = vsel %vm1117_vm14, %v1100_v24, %v968_v23  ;;  %v1124_v46 = vsel %vm1117_vm14, %v1102_v38, %v970_v37  ;;  %v1125_v47 = vsel %vm1117_vm14, %v1104_v32, %v972_v31 }
 0x4f1   : > { %v1134_v48 = vcombine.low %v1118_v39, %v1120_v41  ;;  %v1142_v49 = vcombine.low %v1119_v40, %v1121_v42  ;;  %v1150_v50 = vcombine.low %v1122_v44, %v1124_v46  ;;  %v1158_v51 = vcombine.low %v1123_v45, %v1125_v47  ;;  %v1186_v62 = vpop.permute.xlu0 %1185 }
 0x4f3   : > { %v1141_v52 = vrot.slane %v1134_v48, %v2329_v63  ;;  %v1149_v53 = vrot.slane %v1142_v49, %v2329_v63  ;;  %v1157_v54 = vrot.slane %v1150_v50, %v2329_v63  ;;  %v1165_v55 = vrot.slane %v1158_v51, %v2329_v63  ;;  %v1471_v63 = vld [vmem:[%s2438_s14] ss:$0 sm:$0xff] }
 0x4f5   : > { %v1166_v56 = vcombine.low %v1141_v52, %v1149_v53  ;;  %v1174_v58 = vcombine.low %v1157_v54, %v1165_v55 }
 0x4f7   : > { %v1173_v59 = vrot.slane %v1166_v56, %v2332_v4  ;;  %v1181_v60 = vrot.slane %v1174_v58, %v2332_v4 }
 0x4f9   : > { %v1182_v61 = vcombine.low %v1173_v59, %v1181_v60 }
 0x4fb   : > { %v1188_v0 = vadd.f32 %v1186_v62, %v1182_v61 }
 0x4fd   : > { %v1189_v2 = vadd.f32 %v1188_v0, %v2320_v43 }
 0x4ff   : > { %v1191_v5 = vmul.f32 0.70710677, %v1189_v2  ;;  %v1190_v8 = vmul.f32 0.5, %v1189_v2 }
 0x501   : > { %1732 = verf.f32 %v1191_v5 }
 0x50e   : > { %v1733_v6 = vpop.eup %1732 }
 0x50f   : > { %v1193_v7 = vadd.f32 1.0, %v1733_v6 }
 0x511   : > { %v1194_v9 = vmul.f32 %v1193_v7, %v1190_v8 }
 0x513   : > { %1592 = vmatmul.mubr.f32.vlgmr.msra.gmra.mxu1 %v1194_v9 }
 0x5d3   : > { %v1284_v4 = vpop.f32.mrf.mxu1 }
 0x5d4   : > { %v1285_v10 = vadd.f32 %v1471_v63, %v1284_v4 }
 0x5d5   : > { %v1593_v43 = vpop.f32.mrf.mxu1 }
 0x5d6   : > { %v1288_v11 = vadd.f32 %v1285_v10, %v2288_v1 }
 0x5d8   : > { %1289 = vst [vmem:[%s592_s18] sm:$0xff] %v1288_v11 }
 0x5d9   : > { %1955 = shalt.err (!%p1952_p0)
}
 0x5da   : > { %s1956_s22 = scalar_lea.hbm %s1302_s20, 128  ;;  %s1960_s26 = scalar_lea.hbm %s2439_s15, 256 }
 0x5db   : > { %p1957_p12 = scmp.ne.s32.totalorder %s1302_s20, %s1956_s22  ;;  %p1961_p9 = scmp.lt.s32.totalorder %s1302_s20, %s2439_s15 }
 0x5dc   : > { %p1962_p3 = scmp.lt.s32.totalorder %s1960_s26, %s1956_s22 }
 0x5dd   : > { %p1958_p1 = pnand %p1957_p12, %p2473_p10 }
 0x5de   : > { %p1963_p5 = por %p1962_p3, %p1961_p9 }
 0x5df   : > { %p1959_p2 = pneg %p1958_p1 }
 0x5e1   : > { %p1964_p6 = pnand %p1963_p5, %p1959_p2 }
 0x5e3   : > { %1967 = shalt.err (!%p1964_p6)
}
 0x5e4   : > { %1626 = dma.vmem_to_hbm [thread:$0]  (%p2473_p10), %s1305_s27, 128, %s1302_s20, %s1291_s25  }
 0x5e5 PF: > { %s2474_s17 = sld [smem:[#allocation24_spill]]  ;;  %p1673_p4 = scmp.ge.s32.totalorder %s2022_s23, 2 }
 0x5e6   : > { %s2475_s1 = sld [smem:[#allocation28_spill]] }
 0x5eb   : > { %s1316_s30 = sand.u32 1, %s2474_s17  }
 0x5ec   : > { %p2476_p13 = scmp.ne.s32.totalorder %s2475_s1, 0  ;;  %s1317_s24 = scalar_lea.sflag [#allocation5], %s1316_s30 }
 0x5ee   : > { %p1654_p7 = pnand %p1673_p4, %p2476_p13 }
 0x5f0   : > { %p1655_p8 = pneg %p1654_p7 }
 0x5f2   : > { %2005 = dma.done.wait (%p1655_p8), %s1317_s24, 128  }
 0x5f3   : > { %2007 = vsyncadd (%p1655_p8), %s1317_s24, 4294967168  ;;  %s2477_s23 = sld [smem:[#allocation26_spill]]  ;;  %s2480_s20 = smov %s2014_s21 }
 0x5f4   : > { %s2478_s8 = sld [smem:[#allocation25_spill]] }
 0x5f5   : > { %s2479_s22 = sld [smem:[#allocation27_spill]] }
 0x5f9   : > { %p32_p11 = scmp.ge.s32.totalorder %s2477_s23, 4  }
 0x5fa   : > { %s2481_s21 = smov %s2478_s8 }
 0x5fb   :  { %34 = sbr.rel (!%p32_p11) target bundleno = 11 (0xb), region = 148 }
 0x600   :  { %1322 = vsyncpa [#allocation4], 1 }
 0x601   :  { %1324 = vsyncpa [#allocation4 + $0x1], 1 }
 0x602   :  { %1325 = vsyncpa [#allocation7], 1 }
 0x603   :  { %1326 = vsyncpa [#allocation10], 1 }
 0x604   :  { %1327 = vsyncpa [#allocation13], 1 }
 0x605   :  { %1328 = vsyncpa [#allocation16], 1 }
 0x606   :  { %1329 = vsyncpa [#allocation5], 1 }
 0x607   :  { %1331 = vsyncpa [#allocation5 + $0x1], 1 }

</bundles_post_ra>
